<compile_context>
chip_gen: v6e
topology: v6e:2x2x1
jax: 0.10.0
libtpu: 0.0.40
codegen_flags: <defaults>
</compile_context>

<pallas_src>
import numpy as np
import jax
import jax.numpy as jnp
from jax.experimental import pallas as pl
from jax.experimental.pallas import tpu as pltpu

# ---------------------------------------------------------------------------
# db4 filter bank (same constants as the PyTorch __init__).
# ---------------------------------------------------------------------------
_DB4 = np.array(
    [0.2303778133088964, 0.7148465705529155, 0.6308807679298587,
     -0.027983769416859854, -0.18703481171888114, 0.030841381835986965,
     0.032883011666982945, -0.010597401785069032], dtype=np.float64)
_H_TAPS = _DB4
_G_TAPS = np.array([(-1.0) ** n * _DB4[7 - n] for n in range(8)],
                   dtype=np.float64)

PAD = 3
K = 8

# 2D filters (LL, LH, HL, HH) -- used only by the pure-JAX reference check.
FILTERS = np.stack(
    [np.outer(_H_TAPS, _H_TAPS), np.outer(_H_TAPS, _G_TAPS),
     np.outer(_G_TAPS, _H_TAPS), np.outer(_G_TAPS, _G_TAPS)],
    axis=0).astype(np.float32)

# f32 parity with the PyTorch float32 conv; the kernel is memory-bound so the
# extra MXU passes are hidden.  Use Precision.DEFAULT for bf16-pass speed.
_PRECISION = jax.lax.Precision.HIGHEST


def _round_up(v, m):
    return (v + m - 1) // m * m


def _vmem_limit_bytes():
    cap = 64 * 1024 * 1024
    try:
        info = pltpu.get_tpu_info()
        cap = int(getattr(info, "vmem_capacity_bytes", cap))
    except Exception:
        pass
    # 96 MiB on v5e/v6e (128 MiB physical), 48 MiB on v7x (64 MiB physical).
    return max(32 * 1024 * 1024, min(100 * 1024 * 1024, (cap * 3) // 4))


_VMEM_LIMIT = _vmem_limit_bytes()


def _downsample_matrix(taps, n_out, n_in):
    """D[i, r] = taps[r - 2*i] for 0 <= r - 2*i < 8, else 0.  (D @ x)[i] is the
    stride-2 cross-correlation sum_p taps[p] * x[2*i + p] (F.conv2d convention)."""
    d = np.zeros((n_out, n_in), dtype=np.float64)
    for i in range(n_out):
        n_taps = min(K, n_in - 2 * i)
        d[i, 2 * i:2 * i + n_taps] = taps[:n_taps]
    return d.astype(np.float32)


def _fused_filter_matrices(hp_pad, wp_pad, h_out, w_out):
    """Fused constants: DW (wp_pad, 2*w_out) = [DhW.T | DgW.T],
    DH (2*h_out, hp_pad) = [DhH ; DgH].  Quadrants of DH @ (X @ DW) are
    [[LL, LH], [HL, HH]]."""
    dhw = _downsample_matrix(_H_TAPS, w_out, wp_pad)
    dgw = _downsample_matrix(_G_TAPS, w_out, wp_pad)
    dw_full = np.ascontiguousarray(np.concatenate([dhw, dgw], axis=0).T)
    dhh = _downsample_matrix(_H_TAPS, h_out, hp_pad)
    dgh = _downsample_matrix(_G_TAPS, h_out, hp_pad)
    dh_full = np.concatenate([dhh, dgh], axis=0)
    return jnp.asarray(dw_full), jnp.asarray(dh_full)


def _const_spec(shape):
    """BlockSpec for a grid-invariant operand; single-buffered when supported."""
    index_map = lambda g: (0,) * len(shape)
    buffered = getattr(pl, "Buffered", None)
    if buffered is not None:
        try:
            return pl.BlockSpec(shape, index_map, pipeline_mode=buffered(1))
        except TypeError:  # older jax without pipeline_mode kwarg
            pass
    return pl.BlockSpec(shape, index_map)


def _choose_nt(n_planes, hp_pad, wp_pad, h2, w2):
    """Planes per grid step: fill VMEM / the MXU M dimension, but keep >= 2
    grid steps (v7x megacore) and prefer nt | n_planes (no padding/slicing)."""
    per_plane = 4 * (2 * hp_pad * wp_pad   # X block, double-buffered
                     + 2 * h2 * w2         # out block, double-buffered
                     + hp_pad * w2)        # [Ch|Cg] scratch
    const = 2 * 4 * (wp_pad * w2 + h2 * hp_pad)
    budget = (6 * _VMEM_LIMIT) // 10 - const
    nt = max(1, min(n_planes, budget // max(per_plane, 1), 64))
    if n_planes >= 2:
        nt = min(nt, (n_planes + 1) // 2)   # at least 2 grid steps
    nt = max(nt, 1)
    for cand in range(nt, 0, -1):           # largest divisor of n_planes <= nt
        if n_planes % cand == 0:
            if 2 * cand >= nt:               # accept unless it halves the block
                nt = cand
            break
    return nt


def _make_kernel(nt, hp_pad):
    def kernel(x_ref, dw_ref, dh_ref, o_ref, c_ref):
        # x_ref : (nt*hp_pad, wp_pad)    nt padded planes, rows stacked
        # dw_ref: (wp_pad, 2*w_out)      fused [DhW.T | DgW.T]
        # dh_ref: (2*h_out, hp_pad)      fused [DhH ; DgH]
        # o_ref : (nt, 2*h_out, 2*w_out) quadrants [[LL,LH],[HL,HH]] per plane
        # c_ref : (nt*hp_pad, 2*w_out)   VMEM scratch for [Ch | Cg]
        # Pass 1 (contract W): one MXU matmul for all nt planes -> scratch.
        c_ref[...] = jnp.dot(x_ref[...], dw_ref[...],
                             precision=_PRECISION,
                             preferred_element_type=jnp.float32)
        dh = dh_ref[...]
        # Pass 2 (contract H): one fused quadrant matmul + one store per plane.
        for n in range(nt):
            lo = n * hp_pad                     # static, multiple of 8
            o_ref[n] = jnp.dot(dh, c_ref[lo:lo + hp_pad, :],
                               precision=_PRECISION,
                               preferred_element_type=jnp.float32)
    return kernel


def _dwt_pallas(x):
    """x: (B, C, H, W) float32. Returns coeffs (B, C, 4, H_out, W_out) float32."""
    B, C, H, W = x.shape
    h_out = (H + 2 * PAD - K) // 2 + 1
    w_out = (W + 2 * PAD - K) // 2 + 1
    hp, wp = H + 2 * PAD, W + 2 * PAD
    hp_pad = _round_up(hp, 8)            # sublane-aligned rows per plane
    wp_pad = _round_up(wp, 128)          # lane-aligned contraction dim
    h2, w2 = 2 * h_out, 2 * w_out
    n_planes = B * C

    nt = _choose_nt(n_planes, hp_pad, wp_pad, h2, w2)
    n_pad = _round_up(n_planes, nt)
    grid = (n_pad // nt,)

    dw_full, dh_full = _fused_filter_matrices(hp_pad, wp_pad, h_out, w_out)

    # Single pad op: plane-count pad + conv pad + sublane/lane alignment.
    x3 = x.astype(jnp.float32).reshape(n_planes, H, W)
    x3 = jnp.pad(x3, ((0, n_pad - n_planes),
                      (PAD, PAD + (hp_pad - hp)),
                      (PAD, PAD + (wp_pad - wp))))
    x2d = x3.reshape(n_pad * hp_pad, wp_pad)   # contiguous, no relayout

    out = pl.pallas_call(
        _make_kernel(nt, hp_pad),
        out_shape=jax.ShapeDtypeStruct((n_pad, h2, w2), jnp.float32),
        grid_spec=pltpu.PrefetchScalarGridSpec(
            num_scalar_prefetch=0,
            grid=grid,
            in_specs=[
                pl.BlockSpec((nt * hp_pad, wp_pad), lambda g: (g, 0)),
                _const_spec((wp_pad, w2)),
                _const_spec((h2, hp_pad)),
            ],
            out_specs=pl.BlockSpec((nt, h2, w2), lambda g: (g, 0, 0)),
            scratch_shapes=[pltpu.VMEM((nt * hp_pad, w2), jnp.float32)],
        ),
        compiler_params=pltpu.CompilerParams(
            dimension_semantics=("parallel",),
            vmem_limit_bytes=_VMEM_LIMIT),
    )(x2d, dw_full, dh_full)

    if n_pad != n_planes:
        out = out[:n_planes]
    # Quadrants [[LL, LH], [HL, HH]] -> band axis ordering (LL, LH, HL, HH).
    coeffs = out.reshape(B, C, 2, h_out, 2, w_out).transpose(0, 1, 2, 4, 3, 5)
    return coeffs.reshape(B, C, 4, h_out, w_out)


@jax.jit
def _dwt_forward(x):
    """Runs the kernel and builds the nested pywt-style list in one dispatch."""
    coeffs = _dwt_pallas(x)
    B, C = coeffs.shape[0], coeffs.shape[1]
    coeffs_list = [
        [(coeffs[b, c, 0:1], (coeffs[b, c, 1:2], coeffs[b, c, 2:3],
                              coeffs[b, c, 3:4])) for c in range(C)]
        for b in range(B)]
    return coeffs_list, coeffs


def daubechies_dwt(x):
    """Mirror of DaubechiesDWT.forward: returns the nested coeffs_list."""
    coeffs_list, _ = _dwt_forward(x)
    return coeffs_list


def _reference(x):
    """Pure-JAX reference: grouped conv2d identical to the PyTorch forward."""
    B, C, H, W = x.shape
    weight = jnp.tile(jnp.asarray(FILTERS)[:, None, :, :], (C, 1, 1, 1))
    coeffs = jax.lax.conv_general_dilated(
        x.astype(jnp.float32), weight,
        window_strides=(2, 2), padding=((PAD, PAD), (PAD, PAD)),
        dimension_numbers=("NCHW", "OIHW", "NCHW"),
        feature_group_count=C, precision=jax.lax.Precision.HIGHEST)
    h_out, w_out = coeffs.shape[-2], coeffs.shape[-1]
    return coeffs.reshape(B, C, 4, h_out, w_out)


if __name__ == "__main__":
    key = jax.random.PRNGKey(0)

    # Primary test: shapes implied by the module usage.
    x = jax.random.normal(key, (2, 4, 16, 16), dtype=jnp.float32)
    coeffs_list, out = _dwt_forward(x)
    out = jax.block_until_ready(out)
    ref = jax.block_until_ready(_reference(x))
    np.testing.assert_allclose(np.asarray(out), np.asarray(ref),
                               rtol=1e-4, atol=1e-4)

    # Nested pywt-style structure sanity (matches module return layout).
    a, (bc, cc, dc) = coeffs_list[0][0]
    assert a.shape == (1, 8, 8) and bc.shape == (1, 8, 8)
    jax.block_until_ready(a)
    cl = daubechies_dwt(x)
    assert len(cl) == 2 and len(cl[0]) == 4

    # Secondary test: odd spatial sizes / odd channel count.
    x2 = jax.random.normal(jax.random.PRNGKey(1), (1, 3, 33, 47),
                           dtype=jnp.float32)
    _, out2 = _dwt_forward(x2)
    out2 = jax.block_until_ready(out2)
    ref2 = jax.block_until_ready(_reference(x2))
    np.testing.assert_allclose(np.asarray(out2), np.asarray(ref2),
                               rtol=1e-4, atol=1e-4)

    print("KERNEL_OK")
</pallas_src>

<mosaic_0001>
module attributes {stable_mosaic.version = 11 : i64} {
  func.func @kernel(%arg0: i32, %arg1: memref<96x128xf32, #tpu.memory_space<vmem>>, %arg2: memref<128x16xf32, #tpu.memory_space<vmem>>, %arg3: memref<16x24xf32, #tpu.memory_space<vmem>>, %arg4: memref<4x16x16xf32, #tpu.memory_space<vmem>>, %arg5: memref<96x16xf32, #tpu.memory_space<vmem>>) attributes {dimension_semantics = [#tpu.dimension_semantics<parallel>], iteration_bounds = array<i64: 2>, scalar_prefetch = 0 : i64, scratch_operands = 1 : i64, tpu.core_type = #tpu.core_type<tc>, window_params = [{transform_indices = @transform_0, window_bounds = array<i64: 96, 128>}, {pipeline_mode = #tpu.pipeline_mode<synchronous>, transform_indices = @transform_1, window_bounds = array<i64: 128, 16>}, {pipeline_mode = #tpu.pipeline_mode<synchronous>, transform_indices = @transform_2, window_bounds = array<i64: 16, 24>}, {transform_indices = @transform_3, window_bounds = array<i64: 4, 16, 16>}]} {
    %c0 = arith.constant 0 : index
    %c0_0 = arith.constant 0 : index
    %0 = vector.load %arg1[%c0, %c0_0] : memref<96x128xf32, #tpu.memory_space<vmem>>, vector<96x128xf32>
    %c0_1 = arith.constant 0 : index
    %c0_2 = arith.constant 0 : index
    %1 = vector.load %arg2[%c0_1, %c0_2] : memref<128x16xf32, #tpu.memory_space<vmem>>, vector<128x16xf32>
    %cst = arith.constant dense<0.000000e+00> : vector<96x16xf32>
    %2 = tpu.matmul %0, %1, %cst {dimension_numbers = #tpu.dot_dimension_numbers<[1], [0], [0], [1], [0, 0, 1, 1], [], []>, precision = #tpu.contract_precision<fp32>} : vector<96x128xf32>, vector<128x16xf32>, vector<96x16xf32> -> vector<96x16xf32>
    %c0_3 = arith.constant 0 : index
    %c0_4 = arith.constant 0 : index
    %3 = vector.load %arg5[%c0_3, %c0_4] : memref<96x16xf32, #tpu.memory_space<vmem>>, vector<96x16xf32>
    tpu.vector_store %arg5[%c0_3, %c0_4], %2 {strides = array<i32>} : memref<96x16xf32, #tpu.memory_space<vmem>>, vector<96x16xf32>,
    %c0_5 = arith.constant 0 : index
    %c0_6 = arith.constant 0 : index
    %4 = vector.load %arg3[%c0_5, %c0_6] : memref<16x24xf32, #tpu.memory_space<vmem>>, vector<16x24xf32>
    %c0_7 = arith.constant 0 : index
    %c0_8 = arith.constant 0 : index
    %5 = vector.load %arg5[%c0_7, %c0_8] : memref<96x16xf32, #tpu.memory_space<vmem>>, vector<24x16xf32>
    %cst_9 = arith.constant dense<0.000000e+00> : vector<16x16xf32>
    %6 = tpu.matmul %4, %5, %cst_9 {dimension_numbers = #tpu.dot_dimension_numbers<[1], [0], [0], [1], [0, 0, 1, 1], [], []>, precision = #tpu.contract_precision<fp32>} : vector<16x24xf32>, vector<24x16xf32>, vector<16x16xf32> -> vector<16x16xf32>
    %c0_10 = arith.constant 0 : index
    %c0_11 = arith.constant 0 : index
    %c0_12 = arith.constant 0 : index
    %7 = vector.load %arg4[%c0_10, %c0_11, %c0_12] : memref<4x16x16xf32, #tpu.memory_space<vmem>>, vector<1x16x16xf32>
    %8 = vector.shape_cast %7 : vector<1x16x16xf32> to vector<16x16xf32>
    %9 = vector.shape_cast %6 : vector<16x16xf32> to vector<1x16x16xf32>
    tpu.vector_store %arg4[%c0_10, %c0_11, %c0_12], %9 {strides = array<i32>} : memref<4x16x16xf32, #tpu.memory_space<vmem>>, vector<1x16x16xf32>,
    %c24 = arith.constant 24 : index
    %c0_13 = arith.constant 0 : index
    %10 = vector.load %arg5[%c24, %c0_13] : memref<96x16xf32, #tpu.memory_space<vmem>>, vector<24x16xf32>
    %cst_14 = arith.constant dense<0.000000e+00> : vector<16x16xf32>
    %11 = tpu.matmul %4, %10, %cst_14 {dimension_numbers = #tpu.dot_dimension_numbers<[1], [0], [0], [1], [0, 0, 1, 1], [], []>, precision = #tpu.contract_precision<fp32>} : vector<16x24xf32>, vector<24x16xf32>, vector<16x16xf32> -> vector<16x16xf32>
    %c1 = arith.constant 1 : index
    %c0_15 = arith.constant 0 : index
    %c0_16 = arith.constant 0 : index
    %12 = vector.load %arg4[%c1, %c0_15, %c0_16] : memref<4x16x16xf32, #tpu.memory_space<vmem>>, vector<1x16x16xf32>
    %13 = vector.shape_cast %12 : vector<1x16x16xf32> to vector<16x16xf32>
    %14 = vector.shape_cast %11 : vector<16x16xf32> to vector<1x16x16xf32>
    tpu.vector_store %arg4[%c1, %c0_15, %c0_16], %14 {strides = array<i32>} : memref<4x16x16xf32, #tpu.memory_space<vmem>>, vector<1x16x16xf32>,
    %c48 = arith.constant 48 : index
    %c0_17 = arith.constant 0 : index
    %15 = vector.load %arg5[%c48, %c0_17] : memref<96x16xf32, #tpu.memory_space<vmem>>, vector<24x16xf32>
    %cst_18 = arith.constant dense<0.000000e+00> : vector<16x16xf32>
    %16 = tpu.matmul %4, %15, %cst_18 {dimension_numbers = #tpu.dot_dimension_numbers<[1], [0], [0], [1], [0, 0, 1, 1], [], []>, precision = #tpu.contract_precision<fp32>} : vector<16x24xf32>, vector<24x16xf32>, vector<16x16xf32> -> vector<16x16xf32>
    %c2 = arith.constant 2 : index
    %c0_19 = arith.constant 0 : index
    %c0_20 = arith.constant 0 : index
    %17 = vector.load %arg4[%c2, %c0_19, %c0_20] : memref<4x16x16xf32, #tpu.memory_space<vmem>>, vector<1x16x16xf32>
    %18 = vector.shape_cast %17 : vector<1x16x16xf32> to vector<16x16xf32>
    %19 = vector.shape_cast %16 : vector<16x16xf32> to vector<1x16x16xf32>
    tpu.vector_store %arg4[%c2, %c0_19, %c0_20], %19 {strides = array<i32>} : memref<4x16x16xf32, #tpu.memory_space<vmem>>, vector<1x16x16xf32>,
    %c72 = arith.constant 72 : index
    %c0_21 = arith.constant 0 : index
    %20 = vector.load %arg5[%c72, %c0_21] : memref<96x16xf32, #tpu.memory_space<vmem>>, vector<24x16xf32>
    %cst_22 = arith.constant dense<0.000000e+00> : vector<16x16xf32>
    %21 = tpu.matmul %4, %20, %cst_22 {dimension_numbers = #tpu.dot_dimension_numbers<[1], [0], [0], [1], [0, 0, 1, 1], [], []>, precision = #tpu.contract_precision<fp32>} : vector<16x24xf32>, vector<24x16xf32>, vector<16x16xf32> -> vector<16x16xf32>
    %c3 = arith.constant 3 : index
    %c0_23 = arith.constant 0 : index
    %c0_24 = arith.constant 0 : index
    %22 = vector.load %arg4[%c3, %c0_23, %c0_24] : memref<4x16x16xf32, #tpu.memory_space<vmem>>, vector<1x16x16xf32>
    %23 = vector.shape_cast %22 : vector<1x16x16xf32> to vector<16x16xf32>
    %24 = vector.shape_cast %21 : vector<16x16xf32> to vector<1x16x16xf32>
    tpu.vector_store %arg4[%c3, %c0_23, %c0_24], %24 {strides = array<i32>} : memref<4x16x16xf32, #tpu.memory_space<vmem>>, vector<1x16x16xf32>,
    return
  }
  func.func @transform_0(%arg0: i32) -> (i32, i32) {
    %c0_i32 = arith.constant 0 : i32
    %c0_i32_0 = arith.constant 0 : i32
    return %arg0, %c0_i32 : i32, i32
  }
  func.func @transform_1(%arg0: i32) -> (i32, i32) {
    %c0_i32 = arith.constant 0 : i32
    %c0_i32_0 = arith.constant 0 : i32
    %c0_i32_1 = arith.constant 0 : i32
    return %c0_i32, %c0_i32_0 : i32, i32
  }
  func.func @transform_2(%arg0: i32) -> (i32, i32) {
    %c0_i32 = arith.constant 0 : i32
    %c0_i32_0 = arith.constant 0 : i32
    %c0_i32_1 = arith.constant 0 : i32
    return %c0_i32, %c0_i32_0 : i32, i32
  }
  func.func @transform_3(%arg0: i32) -> (i32, i32, i32) {
    %c0_i32 = arith.constant 0 : i32
    %c0_i32_0 = arith.constant 0 : i32
    %c0_i32_1 = arith.constant 0 : i32
    return %arg0, %c0_i32, %c0_i32_0 : i32, i32, i32
  }
}

</mosaic_0001>

<bundles_post_ra>
// kernel: _dwt_forward.1
= control target key start
LH: loop header
LB: loop body
LE: loop exit
PB: predicated region body
PF: predicated region fallthrough
CT: control target
= control target key end

     0   :  { %s4339_s12 = smov 0   ;;  %s5212_s0 = inlined_call_operand.vmem [shape: f32[192,128], index: 0, kind: input, shape index: {}]   ;;  %s5213_s1 = inlined_call_operand.vmem [shape: f32[128,16], index: 1, kind: input, shape index: {}]   ;;  %s5214_s2 = inlined_call_operand.vmem [shape: f32[16,24], index: 2, kind: input, shape index: {}]   ;;  %s5215_s3 = inlined_call_operand.vmem [shape: f32[8,16,16], index: 3, kind: output, shape index: {}]  }
   0x1 LB: > { %s3481_s13 = sadd.s32 4294967295, %s4317_s12   ;;  %p3485_p0 = scmp.ge.s32.totalorder %s4317_s12, 1  ;;  %s4317_s12 = sphi %s4339_s12, %s13_s12  }
   0x2   : > { %p138_p1 = scmp.lt.s32.totalorder %s4317_s12, 3 }
   0x4   : > { %p139_p2 = pnand %p3485_p0, %p138_p1 }
   0x6   : > { %142 = sbr.rel (%p139_p2) target bundleno = 651 (0x28b), region = 32 }
   0xb   : > { %v203_v0 = vld [vmem:[%s5213_s1 + $0x78] sm:$0xff]  ;;  %v202_v1 = vld [vmem:[%s5213_s1 + $0x70] sm:$0xff]  ;;  %v201_v2 = vld [vmem:[%s5213_s1 + $0x68] sm:$0xff]  ;;  %s163_s20 = smul.u32 12, %s3481_s13  ;;  %vm1336_vm0 = vcmask 195584   ;;  %vm1318_vm1 = vcmask 130048  }
   0xc   : > { %v4358_v3 = vand.u32 4294901760, %v203_v0  ;;  %v4360_v4 = vand.u32 4294901760, %v202_v1  ;;  %v4362_v5 = vand.u32 4294901760, %v201_v2  ;;  %v200_v6 = vld [vmem:[%s5213_s1 + $0x60] sm:$0xff]  ;;  %v199_v7 = vld [vmem:[%s5213_s1 + $0x58] sm:$0xff]  ;;  %v198_v8 = vld [vmem:[%s5213_s1 + $0x50] sm:$0xff] }
   0xd   : > { %v4373_v9 = vand.u32 4294901760, %v200_v6  ;;  %v4375_v10 = vand.u32 4294901760, %v199_v7  ;;  %v4377_v11 = vand.u32 4294901760, %v198_v8  ;;  %v197_v12 = vld [vmem:[%s5213_s1 + $0x48] sm:$0xff]  ;;  %v196_v13 = vld [vmem:[%s5213_s1 + $0x40] sm:$0xff]  ;;  %v195_v18 = vld [vmem:[%s5213_s1 + $0x38] sm:$0xff] }
   0xe   : > { %3787 = vmatprep.subr.mxu0 %v4358_v3  ;;  %v4387_v14 = vsub.f32 %v203_v0, %v4358_v3  ;;  %v4390_v15 = vsub.f32 %v202_v1, %v4360_v4  ;;  %v4392_v16 = vand.u32 4294901760, %v197_v12  ;;  %v4395_v17 = vsub.f32 %v201_v2, %v4362_v5  ;;  %p164_p3 = scmp.lt.s32.totalorder %s163_s20, 23  ;;  %v194_v25 = vld [vmem:[%s5213_s1 + $0x30] sm:$0xff]  ;;  %v193_v35 = vld [vmem:[%s5213_s1 + $0x28] sm:$0xff]  ;;  %v192_v40 = vld [vmem:[%s5213_s1 + $0x20] sm:$0xff]  ;;  %s3487_s30 = sshll.u32 %s3481_s13, 2 }
   0xf   : > { %3788 = vmatpush3.msra.mxu0 %v4358_v3  ;;  %v4402_v19 = vsub.f32 %v200_v6, %v4373_v9  ;;  %v4405_v20 = vsub.f32 %v199_v7, %v4375_v10  ;;  %v4417_v24 = vand.u32 4294901760, %v196_v13  ;;  %v4426_v27 = vand.u32 4294901760, %v195_v18  ;;  %v191_v48 = vld [vmem:[%s5213_s1 + $0x18] sm:$0xff]  ;;  %v190_v59 = vld [vmem:[%s5213_s1 + $0x10] sm:$0xff]  ;;  %v189_v2 = vld [vmem:[%s5213_s1 + $0x8] sm:$0xff]  ;;  %p170_p4 = scmp.lt.s32.totalorder %s3487_s30, 7 }
  0x10   : > { %3789 = vmatprep.subr.mxu0 %v4360_v4  ;;  %v4409_v21 = vand.u32 4294901760, %v4387_v14  ;;  %v4412_v22 = vand.u32 4294901760, %v4390_v15  ;;  %v4415_v23 = vand.u32 4294901760, %v4395_v17  ;;  %s5287_s20 = smov (!%p164_p3, %s163_s20), 23  ;;  %v4432_v29 = vsub.f32 %v198_v8, %v4377_v11 }
  0x11   : > { %3790 = vmatpush3.msra.mxu0 %v4360_v4  ;;  %v4424_v26 = vand.u32 4294901760, %v4402_v19  ;;  %v4429_v28 = vand.u32 4294901760, %v4405_v20  ;;  %v4442_v33 = vsub.f32 %v197_v12, %v4392_v16  ;;  %s3486_s8 = sshll.u32 %s5287_s20, 3  ;;  %v4445_v34 = vand.u32 4294901760, %v194_v25  ;;  %s5289_s30 = smov (!%p170_p4, %s3487_s30), 7 }
  0x12   : > { %3791 = vmatprep.subr.mxu0 %v4362_v5  ;;  %v409_v30 = vsub.f32 %v4387_v14, %v4409_v21  ;;  %v416_v31 = vsub.f32 %v4390_v15, %v4412_v22  ;;  %v423_v32 = vsub.f32 %v4395_v17, %v4415_v23  ;;  %v4454_v39 = vand.u32 4294901760, %v4432_v29  ;;  %s4462_s17 = scalar_lea.vmem %s5212_s0, %s3486_s8  ;;  %s3498_s4 = sshll.u32 %s5289_s30, 4 }
  0x13   : > { %3792 = vmatpush3.msra.mxu0 %v4362_v5  ;;  %v430_v38 = vsub.f32 %v4402_v19, %v4424_v26  ;;  %v437_v41 = vsub.f32 %v4405_v20, %v4429_v28  ;;  %v4468_v42 = vand.u32 4294901760, %v4442_v33  ;;  %v4471_v43 = vsub.f32 %v196_v13, %v4417_v24  ;;  %v176_v49 = vld [vmem:[%s4462_s17] sm:$0xff]  ;;  %v177_v54 = vld [vmem:[%s4462_s17 + $0x8] sm:$0xff]  ;;  %s5191_s13 = scalar_lea.vmem %s5215_s3, %s3498_s4 }
  0x14   : > { %3793 = vmatprep.subr.mxu0 %v4373_v9  ;;  %v410_v36 = vand.u32 4294901760, %v409_v30  ;;  %v417_v37 = vand.u32 4294901760, %v416_v31  ;;  %v424_v44 = vand.u32 4294901760, %v423_v32  ;;  %v4474_v45 = vand.u32 4294901760, %v193_v35 }
  0x15   : > { %3794 = vmatpush3.msra.mxu0 %v4373_v9  ;;  %v4477_v46 = vsub.f32 %v195_v18, %v4426_v27  ;;  %v4480_v47 = vand.u32 4294901760, %v192_v40  ;;  %v431_v50 = vand.u32 4294901760, %v430_v38  ;;  %v444_v51 = vsub.f32 %v4432_v29, %v4454_v39  ;;  %v188_v18 = vld [vmem:[%s5213_s1] sm:$0xff] }
  0x16   : > { %3795 = vmatprep.subr.mxu0 %v4375_v10  ;;  %3837 = vmatprep.subr.mxu1 %v410_v36  ;;  %v4490_v52 = vand.u32 4294901760, %v4471_v43  ;;  %v4493_v53 = vsub.f32 %v194_v25, %v4445_v34  ;;  %v438_v55 = vand.u32 4294901760, %v437_v41  ;;  %v451_v56 = vsub.f32 %v4442_v33, %v4468_v42 }
  0x17   : > { %3796 = vmatpush3.msra.mxu0 %v4375_v10  ;;  %3838 = vmatpush3.msra.mxu1 %v410_v36  ;;  %v4500_v57 = vand.u32 4294901760, %v191_v48  ;;  %v4503_v58 = vand.u32 4294901760, %v4477_v46  ;;  %v4509_v60 = vsub.f32 %v193_v35, %v4474_v45  ;;  %v4511_v61 = vand.u32 4294901760, %v176_v49 }
  0x18   : > { %3797 = vmatprep.subr.mxu0 %v4377_v11  ;;  %3839 = vmatprep.subr.mxu1 %v417_v37  ;;  %v4514_v62 = vand.u32 4294901760, %v177_v54  ;;  %v445_v63 = vand.u32 4294901760, %v444_v51  ;;  %v458_v0 = vsub.f32 %v4471_v43, %v4490_v52  ;;  %v4520_v1 = vand.u32 4294901760, %v4493_v53 }
  0x19   : > { %3798 = vmatpush3.msra.mxu0 %v4377_v11  ;;  %3840 = vmatpush3.msra.mxu1 %v417_v37  ;;  %5251 = vst [vmem:[#allocation3_spill] sm:$0xff] %v4503_v58  ;;  %5252 = vst [vmem:[#allocation4_spill] sm:$0xff] %v4511_v61  ;;  %v4526_v6 = vsub.f32 %v192_v40, %v4480_v47  ;;  %v452_v7 = vand.u32 4294901760, %v451_v56  ;;  %v4529_v8 = vand.u32 4294901760, %v190_v59  ;;  %v4535_v13 = vand.u32 4294901760, %v4509_v60  ;;  %v178_v56 = vld [vmem:[%s4462_s17 + $0x10] sm:$0xff] }
  0x1a   : > { %3799 = vmatprep.subr.mxu0 %v4392_v16  ;;  %3841 = vmatprep.subr.mxu1 %v424_v44  ;;  %5253 = vst [vmem:[#allocation5_spill] sm:$0xff] %v4514_v62  ;;  %5254 = vst [vmem:[#allocation6_spill] sm:$0xff] %v4520_v1  ;;  %v465_v12 = vsub.f32 %v4477_v46, %v4503_v58  ;;  %v4541_v25 = vsub.f32 %v176_v49, %v4511_v61  ;;  %v4547_v31 = vand.u32 4294901760, %v189_v2 }
  0x1b   : > { %3800 = vmatpush3.msra.mxu0 %v4392_v16  ;;  %3842 = vmatpush3.msra.mxu1 %v424_v44  ;;  %5255 = vst [vmem:[#allocation7_spill] sm:$0xff] %v4535_v13  ;;  %v4544_v30 = vsub.f32 %v191_v48, %v4500_v57  ;;  %v4550_v32 = vsub.f32 %v177_v54, %v4514_v62  ;;  %v459_v35 = vand.u32 4294901760, %v458_v0  ;;  %v4556_v37 = vand.u32 4294901760, %v4526_v6  ;;  %v179_v0 = vld [vmem:[%s4462_s17 + $0x18] sm:$0xff] }
  0x1c   : > { %3801 = vmatprep.subr.mxu0 %v4417_v24  ;;  %3843 = vmatprep.subr.mxu1 %v431_v50  ;;  %v472_v36 = vsub.f32 %v4493_v53, %v4520_v1  ;;  %v4559_v38 = vand.u32 4294901760, %v188_v18  ;;  %v4562_v40 = vsub.f32 %v190_v59, %v4529_v8  ;;  %v466_v41 = vand.u32 4294901760, %v465_v12  ;;  %v181_v1 = vld [vmem:[%s4462_s17 + $0x28] sm:$0xff] }
  0x1d   : > { %3802 = vmatpush3.msra.mxu0 %v4417_v24  ;;  %3844 = vmatpush3.msra.mxu1 %v431_v50  ;;  %5256 = vst [vmem:[#allocation8_spill] sm:$0xff] %v4556_v37  ;;  %v479_v44 = vsub.f32 %v4509_v60, %v4535_v13  ;;  %v5216_v48 = vand.u32 4294901760, %v4541_v25  ;;  %v4569_v49 = vand.u32 4294901760, %v4544_v30  ;;  %v5217_v50 = vand.u32 4294901760, %v4550_v32 }
  0x1e   : > { %3803 = vmatprep.subr.mxu0 %v4426_v27  ;;  %3845 = vmatprep.subr.mxu1 %v438_v55  ;;  %v4574_v51 = vsub.f32 %v189_v2, %v4547_v31  ;;  %v473_v54 = vand.u32 4294901760, %v472_v36  ;;  %v4582_v59 = vand.u32 4294901760, %v4562_v40  ;;  %v4601_v36 = vand.u32 4294901760, %v178_v56 }
  0x1f   : > { %3804 = vmatpush3.msra.mxu0 %v4426_v27  ;;  %3846 = vmatpush3.msra.mxu1 %v438_v55  ;;  %5257 = vst [vmem:[#allocation9_spill] sm:$0xff] %v4569_v49  ;;  %v486_v55 = vsub.f32 %v4526_v6, %v4556_v37  ;;  %v480_v2 = vand.u32 4294901760, %v479_v44  ;;  %v493_v12 = vsub.f32 %v4544_v30, %v4569_v49  ;;  %v180_v49 = vld [vmem:[%s4462_s17 + $0x20] sm:$0xff] }
  0x20   : > { %3805 = vmatprep.subr.mxu0 %v4445_v34  ;;  %3847 = vmatprep.subr.mxu1 %v445_v63  ;;  %5258 = vst [vmem:[#allocation10_spill] sm:$0xff] %v4582_v59  ;;  %v4619_v58 = vsub.f32 %v178_v56, %v4601_v36 }
  0x21   : > { %3806 = vmatpush3.msra.mxu0 %v4445_v34  ;;  %3848 = vmatpush3.msra.mxu1 %v445_v63  ;;  %v4585_v63 = vsub.f32 %v188_v18, %v4559_v38  ;;  %v298_v18 = vsub.f32 %v4550_v32, %v5217_v50  ;;  %v487_v44 = vand.u32 4294901760, %v486_v55  ;;  %v494_v13 = vand.u32 4294901760, %v493_v12 }
  0x22   : > { %3807 = vmatprep.subr.mxu0 %v4474_v45  ;;  %3849 = vmatprep.subr.mxu1 %v452_v7 }
  0x23   : > { %3808 = vmatpush3.msra.mxu0 %v4474_v45  ;;  %3850 = vmatpush3.msra.mxu1 %v452_v7  ;;  %v288_v7 = vsub.f32 %v4541_v25, %v5216_v48  ;;  %v4604_v48 = vand.u32 4294901760, %v179_v0  ;;  %v4610_v50 = vand.u32 4294901760, %v4585_v63  ;;  %v299_v55 = vand.u32 4294901760, %v298_v18 }
  0x24   : > { %3809 = vmatprep.subr.mxu0 %v4480_v47  ;;  %3851 = vmatprep.subr.mxu1 %v459_v35  ;;  %v4630_v18 = vand.u32 4294901760, %v181_v1 }
  0x25   : > { %3810 = vmatpush3.msra.mxu0 %v4480_v47  ;;  %3852 = vmatpush3.msra.mxu1 %v459_v35  ;;  %v4599_v35 = vand.u32 4294901760, %v4574_v51  ;;  %5260 = vst [vmem:[#allocation12_spill] sm:$0xff] %v4610_v50  ;;  %v289_v37 = vand.u32 4294901760, %v288_v7  ;;  %v4625_v7 = vand.u32 4294901760, %v180_v49  ;;  %v514_v12 = vsub.f32 %v4585_v63, %v4610_v50  ;;  %v183_v50 = vld [vmem:[%s4462_s17 + $0x38] sm:$0xff] }
  0x26   : > { %3811 = vmatprep.subr.mxu0 %v4500_v57  ;;  %3853 = vmatprep.subr.mxu1 %v466_v41 }
  0x27   : > { %3812 = vmatpush3.msra.mxu0 %v4500_v57  ;;  %3854 = vmatpush3.msra.mxu1 %v466_v41  ;;  %5259 = vst [vmem:[#allocation11_spill] sm:$0xff] %v4599_v35  ;;  %v500_v41 = vsub.f32 %v4562_v40, %v4582_v59  ;;  %v4623_v59 = vsub.f32 %v179_v0, %v4604_v48  ;;  %v5235_v0 = vand.u32 4294901760, %v4619_v58 }
  0x28   : > { %3813 = vmatprep.subr.mxu0 %v4529_v8  ;;  %3855 = vmatprep.subr.mxu1 %v473_v54 }
  0x29   : > { %3814 = vmatpush3.msra.mxu0 %v4529_v8  ;;  %3856 = vmatpush3.msra.mxu1 %v473_v54  ;;  %v507_v54 = vsub.f32 %v4574_v51, %v4599_v35  ;;  %v182_v35 = vld [vmem:[%s4462_s17 + $0x30] sm:$0xff] }
  0x2a   : > { %3815 = vmatprep.subr.mxu0 %v4547_v31  ;;  %3857 = vmatprep.subr.mxu1 %v480_v2 }
  0x2b   : > { %3816 = vmatpush3.msra.mxu0 %v4547_v31  ;;  %3858 = vmatpush3.msra.mxu1 %v480_v2  ;;  %v501_v2 = vand.u32 4294901760, %v500_v41  ;;  %v508_v56 = vand.u32 4294901760, %v507_v54  ;;  %v4638_v41 = vsub.f32 %v180_v49, %v4625_v7  ;;  %v4652_v49 = vand.u32 4294901760, %v183_v50 }
  0x2c   : > { %3817 = vmatprep.subr.mxu0 %v4559_v38  ;;  %3859 = vmatprep.subr.mxu1 %v487_v44 }
  0x2d   : > { %3818 = vmatpush3.msra.mxu0 %v4559_v38  ;;  %3860 = vmatpush3.msra.mxu1 %v487_v44  ;;  %v5234_v44 = vand.u32 4294901760, %v4623_v59 }
  0x2e   : > { %3819 = vmatprep.mubr.f32.mxu0 %v289_v37  ;;  %3861 = vmatprep.subr.mxu1 %v494_v13  ;;  %v515_v37 = vand.u32 4294901760, %v514_v12 }
  0x2f   : > { %3887 = vmatprep.subr.mxu0 %v4387_v14  ;;  %3820 = vmatmul.mubr.f32.vlgmr.msra.gmra.mxu0 %v299_v55  ;;  %v4643_v55 = vsub.f32 %v181_v1, %v4630_v18  ;;  %v318_v1 = vsub.f32 %v4623_v59, %v5234_v44  ;;  %v4670_v44 = vsub.f32 %v183_v50, %v4652_v49 }
  0x30   : > { %3862 = vmatpush3.msra.mxu1 %v494_v13  ;;  %3888 = vmatpush3.msra.mxu0 %v4387_v14  ;;  %v4646_v13 = vand.u32 4294901760, %v182_v35  ;;  %v308_v14 = vsub.f32 %v4619_v58, %v5235_v0 }
  0x31   : > { %3863 = vmatprep.subr.mxu1 %v501_v2  ;;  %3889 = vmatprep.subr.mxu0 %v4390_v15  ;;  %v5237_v54 = vand.u32 4294901760, %v4643_v55 }
  0x32   : > { %3864 = vmatpush3.msra.mxu1 %v501_v2  ;;  %3890 = vmatpush3.msra.mxu0 %v4390_v15  ;;  %v5236_v15 = vand.u32 4294901760, %v4638_v41  ;;  %v184_v2 = vld [vmem:[%s4462_s17 + $0x40] sm:$0xff]  ;;  %v4664_v12 = vsub.f32 %v182_v35, %v4646_v13 }
  0x33   : > { %3865 = vmatprep.subr.mxu1 %v508_v56  ;;  %3891 = vmatprep.subr.mxu0 %v4395_v17  ;;  %v4677_v0 = vand.u32 4294901760, %v184_v2 }
  0x34   : > { %3866 = vmatpush3.msra.mxu1 %v508_v56  ;;  %3892 = vmatpush3.msra.mxu0 %v4395_v17  ;;  %v185_v56 = vld [vmem:[%s4462_s17 + $0x48] sm:$0xff]  ;;  %v309_v17 = vand.u32 4294901760, %v308_v14  ;;  %v328_v35 = vsub.f32 %v4638_v41, %v5236_v15  ;;  %v5242_v14 = vand.u32 4294901760, %v4664_v12 }
  0x35   : > { %3867 = vmatprep.subr.mxu1 %v515_v37  ;;  %3893 = vmatprep.subr.mxu0 %v4402_v19  ;;  %v4684_v50 = vand.u32 4294901760, %v185_v56 }
  0x36   : > { %3868 = vmatpush3.msra.mxu1 %v515_v37  ;;  %3869 = vmatprep.mubr.f32.mxu1 %v4511_v61  ;;  %v319_v37 = vand.u32 4294901760, %v318_v1  ;;  %v357_v1 = vand.u32 4294901760, %v4670_v44  ;;  %v329_v15 = vand.u32 4294901760, %v328_v35 }
  0x37   : > { %3894 = vmatpush3.msra.mxu0 %v4402_v19  ;;  %3870 = vmatmul.mubr.f32.vlgmr.msra.gmra.mxu1 %v4514_v62  ;;  %v338_v19 = vsub.f32 %v4643_v55, %v5237_v54  ;;  %v4694_v54 = vsub.f32 %v184_v2, %v4677_v0  ;;  %v187_v62 = vld [vmem:[%s4462_s17 + $0x58] sm:$0xff] }
  0x38   : > { %3895 = vmatprep.subr.mxu0 %v4405_v20  ;;  %3937 = vmatprep.subr.mxu1 %v4358_v3  ;;  %v358_v2 = vsub.f32 %v4670_v44, %v357_v1 }
  0x39   : > { %3896 = vmatpush3.msra.mxu0 %v4405_v20  ;;  %3938 = vmatpush3.msra.mxu1 %v4358_v3  ;;  %v186_v20 = vld [vmem:[%s4462_s17 + $0x50] sm:$0xff]  ;;  %v339_v61 = vand.u32 4294901760, %v338_v19 }
  0x3a   : > { %3897 = vmatprep.subr.mxu0 %v4432_v29  ;;  %3939 = vmatprep.subr.mxu1 %v4360_v4 }
  0x3b   : > { %3822 = vmatprep.mubr.f32.mxu0 %v309_v17  ;;  %3898 = vmatpush3.msra.mxu0 %v4432_v29  ;;  %v4700_v17 = vsub.f32 %v185_v56, %v4684_v50  ;;  %v348_v29 = vsub.f32 %v4664_v12, %v5242_v14  ;;  %v4714_v56 = vand.u32 4294901760, %v187_v62 }
  0x3c   : > { %3940 = vmatpush3.msra.mxu1 %v4360_v4  ;;  %3823 = vmatmul.mubr.f32.gmra.mxu0 %v319_v37  ;;  %v4707_v37 = vand.u32 4294901760, %v186_v20 }
  0x3d   : > { %3899 = vmatprep.subr.mxu0 %v4442_v33  ;;  %3941 = vmatprep.subr.mxu1 %v4362_v5  ;;  %v377_v35 = vand.u32 4294901760, %v4700_v17  ;;  %v349_v19 = vand.u32 4294901760, %v348_v29 }
  0x3e   : > { %3900 = vmatpush3.msra.mxu0 %v4442_v33  ;;  %3942 = vmatpush3.msra.mxu1 %v4362_v5  ;;  %v367_v33 = vand.u32 4294901760, %v4694_v54  ;;  %v4723_v14 = vsub.f32 %v186_v20, %v4707_v37 }
  0x3f   : > { %3901 = vmatprep.subr.mxu0 %v4471_v43  ;;  %3943 = vmatprep.subr.mxu1 %v4373_v9  ;;  %v378_v20 = vsub.f32 %v4700_v17, %v377_v35 }
  0x40   : > { %3825 = vmatprep.mubr.f32.mxu0 %v329_v15  ;;  %3902 = vmatpush3.msra.mxu0 %v4471_v43  ;;  %v359_v43 = vand.u32 4294901760, %v358_v2  ;;  %v4728_v15 = vsub.f32 %v187_v62, %v4714_v56  ;;  %v387_v62 = vand.u32 4294901760, %v4723_v14 }
  0x41   : > { %3944 = vmatpush3.msra.mxu1 %v4373_v9  ;;  %3826 = vmatmul.mubr.f32.gmra.mxu0 %v339_v61  ;;  %v368_v61 = vsub.f32 %v4694_v54, %v367_v33  ;;  %v379_v2 = vand.u32 4294901760, %v378_v20 }
  0x42   : > { %3872 = vmatprep.mubr.f32.mxu1 %v4601_v36  ;;  %3903 = vmatprep.subr.mxu0 %v4477_v46 }
  0x43   : > { %3945 = vmatprep.subr.mxu1 %v4375_v10  ;;  %3873 = vmatmul.mubr.f32.gmra.mxu1 %v4604_v48  ;;  %v369_v29 = vand.u32 4294901760, %v368_v61 }
  0x44   : > { %3904 = vmatpush3.msra.mxu0 %v4477_v46  ;;  %3946 = vmatpush3.msra.mxu1 %v4375_v10  ;;  %v397_v46 = vand.u32 4294901760, %v4728_v15 }
  0x45   : > { %3905 = vmatprep.subr.mxu0 %v4493_v53  ;;  %3947 = vmatprep.subr.mxu1 %v4377_v11 }
  0x46   : > { %3828 = vmatprep.mubr.f32.mxu0 %v349_v19  ;;  %3906 = vmatpush3.msra.mxu0 %v4493_v53  ;;  %v388_v53 = vsub.f32 %v4723_v14, %v387_v62  ;;  %v398_v19 = vsub.f32 %v4728_v15, %v397_v46 }
  0x47   : > { %3948 = vmatpush3.msra.mxu1 %v4377_v11  ;;  %3829 = vmatmul.mubr.f32.gmra.mxu0 %v359_v43 }
  0x48   : > { %3875 = vmatprep.mubr.f32.mxu1 %v4625_v7  ;;  %3907 = vmatprep.subr.mxu0 %v4509_v60  ;;  %v399_v43 = vand.u32 4294901760, %v398_v19 }
  0x49   : > { %3949 = vmatprep.subr.mxu1 %v4392_v16  ;;  %3876 = vmatmul.mubr.f32.gmra.mxu1 %v4630_v18 }
  0x4a   : > { %3908 = vmatpush3.msra.mxu0 %v4509_v60  ;;  %3950 = vmatpush3.msra.mxu1 %v4392_v16  ;;  %v389_v60 = vand.u32 4294901760, %v388_v53 }
  0x4b   : > { %3909 = vmatprep.subr.mxu0 %v4526_v6  ;;  %3951 = vmatprep.subr.mxu1 %v4417_v24 }
  0x4c   : > { %3831 = vmatprep.mubr.f32.mxu0 %v369_v29  ;;  %3910 = vmatpush3.msra.mxu0 %v4526_v6 }
  0x4d   : > { %3952 = vmatpush3.msra.mxu1 %v4417_v24  ;;  %3832 = vmatmul.mubr.f32.gmra.mxu0 %v379_v2 }
  0x4e   : > { %3878 = vmatprep.mubr.f32.mxu1 %v4646_v13  ;;  %3911 = vmatprep.subr.mxu0 %v4544_v30 }
  0x4f   : > { %3953 = vmatprep.subr.mxu1 %v4426_v27  ;;  %3879 = vmatmul.mubr.f32.gmra.mxu1 %v4652_v49 }
  0x50   : > { %3912 = vmatpush3.msra.mxu0 %v4544_v30  ;;  %3954 = vmatpush3.msra.mxu1 %v4426_v27 }
  0x51   : > { %3913 = vmatprep.subr.mxu0 %v4562_v40  ;;  %3955 = vmatprep.subr.mxu1 %v4445_v34 }
  0x52   : > { %3834 = vmatprep.mubr.f32.mxu0 %v389_v60  ;;  %3914 = vmatpush3.msra.mxu0 %v4562_v40 }
  0x53   : > { %3956 = vmatpush3.msra.mxu1 %v4445_v34  ;;  %3835 = vmatmul.mubr.f32.gmra.mxu0 %v399_v43 }
  0x54   : > { %3881 = vmatprep.mubr.f32.mxu1 %v4677_v0  ;;  %3915 = vmatprep.subr.mxu0 %v4574_v51 }
  0x55   : > { %3957 = vmatprep.subr.mxu1 %v4474_v45  ;;  %3882 = vmatmul.mubr.f32.gmra.mxu1 %v4684_v50 }
  0x56   : > { %3916 = vmatpush3.msra.mxu0 %v4574_v51  ;;  %3958 = vmatpush3.msra.mxu1 %v4474_v45 }
  0x57   : > { %3917 = vmatprep.subr.mxu0 %v4585_v63  ;;  %3959 = vmatprep.subr.mxu1 %v4480_v47 }
  0x58   : > { %3918 = vmatpush3.msra.mxu0 %v4585_v63  ;;  %3919 = vmatprep.mubr.f32.mxu0 %v4541_v25 }
  0x59   : > { %3960 = vmatpush3.msra.mxu1 %v4480_v47  ;;  %3884 = vmatprep.mubr.f32.mxu1 %v4707_v37 }
  0x5a   : > { %3920 = vmatmul.mubr.f32.vlgmr.msra.gmra.mxu0 %v4550_v32  ;;  %3961 = vmatprep.subr.mxu1 %v4500_v57 }
  0x5b   : > { %3987 = vmatprep.subr.mxu0 %v4409_v21  ;;  %3885 = vmatmul.mubr.f32.gmra.mxu1 %v4714_v56 }
  0x5c   : > { %3962 = vmatpush3.msra.mxu1 %v4500_v57  ;;  %3988 = vmatpush3.msra.mxu0 %v4409_v21  ;;  %v5261_v21 = vand.u32 4294901760, %v4541_v25 }
  0x5d   : > { %3963 = vmatprep.subr.mxu1 %v4529_v8  ;;  %3989 = vmatprep.subr.mxu0 %v4412_v22 }
  0x5e   : > { %3922 = vmatprep.mubr.f32.mxu0 %v4619_v58  ;;  %3964 = vmatpush3.msra.mxu1 %v4529_v8 }
  0x5f   : > { %3990 = vmatpush3.msra.mxu0 %v4412_v22  ;;  %3965 = vmatprep.subr.mxu1 %v4547_v31  ;;  %v5262_v22 = vand.u32 4294901760, %v4550_v32 }
  0x60   : > { %3923 = vmatmul.mubr.f32.gmra.mxu0 %v4623_v59  ;;  %3991 = vmatprep.subr.mxu0 %v4415_v23 }
  0x61   : > { %3966 = vmatpush3.msra.mxu1 %v4547_v31  ;;  %3992 = vmatpush3.msra.mxu0 %v4415_v23  ;;  %v5263_v23 = vand.u32 4294901760, %v4619_v58 }
  0x62   : > { %3967 = vmatprep.subr.mxu1 %v4559_v38  ;;  %3993 = vmatprep.subr.mxu0 %v4424_v26 }
  0x63   : > { %3925 = vmatprep.mubr.f32.mxu0 %v4638_v41  ;;  %3968 = vmatpush3.msra.mxu1 %v4559_v38 }
  0x64   : > { %3969 = vmatprep.mubr.f32.mxu1 %v5261_v21  ;;  %3994 = vmatpush3.msra.mxu0 %v4424_v26  ;;  %v5264_v26 = vand.u32 4294901760, %v4623_v59 }
  0x65   : > { %3926 = vmatmul.mubr.f32.gmra.mxu0 %v4643_v55  ;;  %3970 = vmatmul.mubr.f32.vlgmr.msra.gmra.mxu1 %v5262_v22 }
  0x66   : > { %3995 = vmatprep.subr.mxu0 %v4429_v28  ;;  %4037 = vmatprep.subr.mxu1 %v4358_v3 }
  0x67   : > { %3996 = vmatpush3.msra.mxu0 %v4429_v28  ;;  %4038 = vmatpush3.msra.mxu1 %v4358_v3  ;;  %v5265_v3 = vand.u32 4294901760, %v4638_v41  ;;  %v5267_v28 = vld [vmem:[#allocation3_spill] sm:$0xff] }
  0x68   : > { %3997 = vmatprep.subr.mxu0 %v4454_v39  ;;  %4039 = vmatprep.subr.mxu1 %v4360_v4 }
  0x69   : > { %3928 = vmatprep.mubr.f32.mxu0 %v4664_v12  ;;  %3972 = vmatprep.mubr.f32.mxu1 %v5263_v23 }
  0x6a   : > { %3998 = vmatpush3.msra.mxu0 %v4454_v39  ;;  %4040 = vmatpush3.msra.mxu1 %v4360_v4  ;;  %v5266_v4 = vand.u32 4294901760, %v4643_v55  ;;  %v5270_v39 = vld [vmem:[#allocation7_spill] sm:$0xff] }
  0x6b   : > { %3929 = vmatmul.mubr.f32.gmra.mxu0 %v4670_v44  ;;  %3973 = vmatmul.mubr.f32.gmra.mxu1 %v5264_v26 }
  0x6c   : > { %3999 = vmatprep.subr.mxu0 %v4468_v42  ;;  %4041 = vmatprep.subr.mxu1 %v4362_v5 }
  0x6d   : > { %4000 = vmatpush3.msra.mxu0 %v4468_v42  ;;  %4042 = vmatpush3.msra.mxu1 %v4362_v5  ;;  %v5268_v5 = vld [vmem:[#allocation6_spill] sm:$0xff]  ;;  %v5276_v42 = vld [vmem:[#allocation4_spill] sm:$0xff] }
  0x6e   : > { %4001 = vmatprep.subr.mxu0 %v4490_v52  ;;  %4043 = vmatprep.subr.mxu1 %v4373_v9 }
  0x6f   : > { %3931 = vmatprep.mubr.f32.mxu0 %v4694_v54  ;;  %3975 = vmatprep.mubr.f32.mxu1 %v5265_v3 }
  0x70   : > { %4002 = vmatpush3.msra.mxu0 %v4490_v52  ;;  %4044 = vmatpush3.msra.mxu1 %v4373_v9  ;;  %v5269_v9 = vand.u32 4294901760, %v4664_v12 }
  0x71   : > { %3932 = vmatmul.mubr.f32.gmra.mxu0 %v4700_v17  ;;  %3976 = vmatmul.mubr.f32.gmra.mxu1 %v5266_v4 }
  0x72   : > { %4003 = vmatprep.subr.mxu0 %v5267_v28  ;;  %4045 = vmatprep.subr.mxu1 %v4375_v10 }
  0x73   : > { %4004 = vmatpush3.msra.mxu0 %v5267_v28  ;;  %4046 = vmatpush3.msra.mxu1 %v4375_v10  ;;  %v5271_v10 = vld [vmem:[#allocation8_spill] sm:$0xff] }
  0x74   : > { %4005 = vmatprep.subr.mxu0 %v5268_v5  ;;  %4047 = vmatprep.subr.mxu1 %v4377_v11 }
  0x75   : > { %3934 = vmatprep.mubr.f32.mxu0 %v4723_v14  ;;  %3978 = vmatprep.mubr.f32.mxu1 %v5269_v9 }
  0x76   : > { %4006 = vmatpush3.msra.mxu0 %v5268_v5  ;;  %4048 = vmatpush3.msra.mxu1 %v4377_v11  ;;  %v5272_v11 = vld [vmem:[#allocation9_spill] sm:$0xff] }
  0x77   : > { %3935 = vmatmul.mubr.f32.gmra.mxu0 %v4728_v15  ;;  %3979 = vmatmul.mubr.f32.gmra.mxu1 %v357_v1 }
  0x78   : > { %4007 = vmatprep.subr.mxu0 %v5270_v39  ;;  %4049 = vmatprep.subr.mxu1 %v4392_v16 }
  0x79   : > { %4008 = vmatpush3.msra.mxu0 %v5270_v39  ;;  %4050 = vmatpush3.msra.mxu1 %v4392_v16  ;;  %v5273_v16 = vld [vmem:[#allocation10_spill] sm:$0xff] }
  0x7a   : > { %4009 = vmatprep.subr.mxu0 %v5271_v10  ;;  %4051 = vmatprep.subr.mxu1 %v4417_v24 }
  0x7b   : > { %3981 = vmatprep.mubr.f32.mxu1 %v367_v33  ;;  %4010 = vmatpush3.msra.mxu0 %v5271_v10 }
  0x7c   : > { %4052 = vmatpush3.msra.mxu1 %v4417_v24  ;;  %4011 = vmatprep.subr.mxu0 %v5272_v11  ;;  %v5274_v24 = vld [vmem:[#allocation11_spill] sm:$0xff] }
  0x7d   : > { %3982 = vmatmul.mubr.f32.gmra.mxu1 %v377_v35  ;;  %4053 = vmatprep.subr.mxu1 %v4426_v27 }
  0x7e   : > { %4012 = vmatpush3.msra.mxu0 %v5272_v11  ;;  %4054 = vmatpush3.msra.mxu1 %v4426_v27  ;;  %v5275_v27 = vld [vmem:[#allocation12_spill] sm:$0xff] }
  0x7f   : > { %4013 = vmatprep.subr.mxu0 %v5273_v16  ;;  %4055 = vmatprep.subr.mxu1 %v4445_v34 }
  0x80   : > { %3984 = vmatprep.mubr.f32.mxu1 %v387_v62  ;;  %4014 = vmatpush3.msra.mxu0 %v5273_v16 }
  0x81   : > { %4056 = vmatpush3.msra.mxu1 %v4445_v34  ;;  %4015 = vmatprep.subr.mxu0 %v5274_v24  ;;  %v5277_v34 = vld [vmem:[#allocation5_spill] sm:$0xff] }
  0x82   : > { %3985 = vmatmul.mubr.f32.gmra.mxu1 %v397_v46  ;;  %4057 = vmatprep.subr.mxu1 %v4474_v45 }
  0x83   : > { %4016 = vmatpush3.msra.mxu0 %v5274_v24  ;;  %4058 = vmatpush3.msra.mxu1 %v4474_v45  ;;  %v1331_v45 = vld [vmem:[%s5214_s2] sm:$0xff] }
  0x84   : > { %4017 = vmatprep.subr.mxu0 %v5275_v27  ;;  %4059 = vmatprep.subr.mxu1 %v4480_v47 }
  0x85   : > { %4018 = vmatpush3.msra.mxu0 %v5275_v27  ;;  %4019 = vmatprep.mubr.f32.mxu0 %v5276_v42 }
  0x86   : > { %4060 = vmatpush3.msra.mxu1 %v4480_v47  ;;  %4020 = vmatmul.mubr.f32.vlgmr.msra.gmra.mxu0 %v5277_v34  ;;  %v1338_v47 = vsel %vm1336_vm0, %v1331_v45, 0  ;;  %v1332_v45 = vld [vmem:[%s5214_s2 + $0x8] sm:$0xff] }
  0x87   : > { %4061 = vmatprep.subr.mxu1 %v4500_v57  ;;  %4022 = vmatprep.mubr.f32.mxu0 %v4601_v36  ;;  %v4918_v52 = vand.u32 4294901760, %v1338_v47 }
  0x88   : > { %4062 = vmatpush3.msra.mxu1 %v4500_v57  ;;  %4069 = vmatprep.mubr.f32.mxu1 %v5276_v42 }
  0x89   : > { %4063 = vmatprep.subr.mxu1 %v4529_v8  ;;  %5278 = vst [vmem:[#allocation3_spill] sm:$0xff] %v4918_v52  ;;  %v4921_v57 = vsub.f32 %v1338_v47, %v4918_v52 }
  0x8a   : > { %4064 = vmatpush3.msra.mxu1 %v4529_v8  ;;  %4023 = vmatmul.mubr.f32.gmra.mxu0 %v4604_v48 }
  0x8b   : > { %4065 = vmatprep.subr.mxu1 %v4547_v31  ;;  %4025 = vmatprep.mubr.f32.mxu0 %v4625_v7  ;;  %5279 = vst [vmem:[#allocation6_spill] sm:$0xff] %v4921_v57  ;;  %v4925_v58 = vand.u32 4294901760, %v4921_v57 }
  0x8c   : > { %4066 = vmatpush3.msra.mxu1 %v4547_v31 }
  0x8d   : > { %4067 = vmatprep.subr.mxu1 %v4559_v38  ;;  %5280 = vst [vmem:[#allocation7_spill] sm:$0xff] %v4925_v58  ;;  %v1414_v6 = vsub.f32 %v4921_v57, %v4925_v58 }
  0x8e   : > { %4068 = vmatpush3.msra.mxu1 %v4559_v38  ;;  %4026 = vmatmul.mubr.f32.gmra.mxu0 %v4630_v18 }
  0x8f   : > { %4070 = vmatmul.mubr.f32.vlgmr.msra.gmra.mxu1 %v5277_v34  ;;  %4028 = vmatprep.mubr.f32.mxu0 %v4646_v13  ;;  %v4929_v8 = vand.u32 4294901760, %v1414_v6 }
  0x90   : > { %4072 = vmatprep.mubr.f32.mxu1 %v4601_v36 }
  0x91   : > { %5281 = vst [vmem:[#allocation8_spill] sm:$0xff] %v4929_v8 }
  0x92   : > { %4029 = vmatmul.mubr.f32.gmra.mxu0 %v4652_v49 }
  0x93   : > { %4073 = vmatmul.mubr.f32.gmra.mxu1 %v4604_v48  ;;  %4031 = vmatprep.mubr.f32.mxu0 %v4677_v0 }
  0x94   : > { %4075 = vmatprep.mubr.f32.mxu1 %v4625_v7 }
  0x96   : > { %4032 = vmatmul.mubr.f32.gmra.mxu0 %v4684_v50 }
  0x97   : > { %4076 = vmatmul.mubr.f32.gmra.mxu1 %v4630_v18  ;;  %4034 = vmatprep.mubr.f32.mxu0 %v4707_v37 }
  0x98   : > { %4078 = vmatprep.mubr.f32.mxu1 %v4646_v13 }
  0x9a   : > { %4035 = vmatmul.mubr.f32.gmra.mxu0 %v4714_v56 }
  0x9b   : > { %4079 = vmatmul.mubr.f32.gmra.mxu1 %v4652_v49  ;;  %4093 = vmatprep.mubr.f32.mxu0 %v4929_v8 }
  0x9c   : > { %4081 = vmatprep.mubr.f32.mxu1 %v4677_v0 }
  0x9f   : > { %4082 = vmatmul.mubr.f32.gmra.mxu1 %v4684_v50 }
  0xa0   : > { %4084 = vmatprep.mubr.f32.mxu1 %v4707_v37 }
  0xa3   : > { %4085 = vmatmul.mubr.f32.gmra.mxu1 %v4714_v56 }
  0xa4   : > { %4102 = vmatprep.mubr.f32.mxu1 %v4918_v52 }
  0xef   : > { %v3821_v25 = vpop.f32.mrf.mxu0 }
  0xf1   : > { %v291_v30 = vpop.f32.mrf.mxu0 }
  0xf7   : > { %v3871_v32 = vpop.f32.mrf.mxu1 }
  0xf8   : > { %v559_v5 = vadd.f32 %v3871_v32, %v3821_v25 }
  0xf9   : > { %v552_v40 = vpop.f32.mrf.mxu1 }
  0xfa   : > { %v553_v10 = vadd.f32 %v552_v40, %v291_v30  ;;  %v1341_v30 = vsel %vm1336_vm0, %v1332_v45, 0 }
  0xfc   : > { %v3824_v31 = vpop.f32.mrf.mxu0 }
  0xfe   : > { %v311_v38 = vpop.f32.mrf.mxu0 }
 0x101   : > { %v3827_v48 = vpop.f32.mrf.mxu0 }
 0x103   : > { %v3874_v51 = vpop.f32.mrf.mxu1  ;;  %v4932_v59 = vpop.f32.mrf.mxu0 }
 0x104   : > { %v571_v24 = vadd.f32 %v3874_v51, %v3824_v31 }
 0x105   : > { %v564_v63 = vpop.f32.mrf.mxu1 }
 0x106   : > { %v565_v6 = vadd.f32 %v564_v63, %v311_v38 }
 0x107   : > { %v4934_v36 = vpop.f32.mrf.mxu0 }
 0x109   : > { %v3877_v7 = vpop.f32.mrf.mxu1  ;;  %v4936_v18 = vpop.f32.mrf.mxu0 }
 0x10a   : > { %v583_v52 = vadd.f32 %v3877_v7, %v3827_v48 }
 0x10b   : > { %v576_v0 = vpop.f32.mrf.mxu1 }
 0x10d   : > { %v4938_v44 = vpop.f32.mrf.mxu0 }
 0x10f   : > { %v4940_v41 = vpop.f32.mrf.mxu1  ;;  %v4942_v55 = vpop.f32.mrf.mxu0 }
 0x110   : > { %v595_v48 = vadd.f32 %v4940_v41, %v4934_v36 }
 0x111   : > { %v4944_v13 = vpop.f32.mrf.mxu1 }
 0x113   : > { %v4946_v49 = vpop.f32.mrf.mxu0 }
 0x115   : > { %v4948_v54 = vpop.f32.mrf.mxu0  ;;  %v4950_v12 = vpop.f32.mrf.mxu1 }
 0x117   : > { %v4952_v14 = vpop.f32.mrf.mxu1 }
 0x11a   : > { %v3921_v50 = vpop.f32.mrf.mxu0 }
 0x11b   : > { %v4954_v17 = vpop.f32.mrf.mxu1  ;;  %v730_v11 = vadd.f32 %v3921_v50, %v559_v5 }
 0x11c   : > { %v722_v1 = vpop.f32.mrf.mxu0 }
 0x11d   : > { %v4956_v56 = vpop.f32.mrf.mxu1  ;;  %v723_v27 = vadd.f32 %v722_v1, %v553_v10 }
 0x120   : > { %v3924_v37 = vpop.f32.mrf.mxu0 }
 0x121   : > { %v744_v8 = vadd.f32 %v3924_v37, %v571_v24 }
 0x122   : > { %v736_v33 = vpop.f32.mrf.mxu0 }
 0x123   : > { %v737_v31 = vadd.f32 %v736_v33, %v565_v6 }
 0x125   : > { %v3971_v35 = vpop.f32.mrf.mxu1  ;;  %v3927_v61 = vpop.f32.mrf.mxu0 }
 0x126   : > { %v897_v42 = vadd.f32 %v3971_v35, %v730_v11  ;;  %v577_v35 = vadd.f32 %v576_v0, %v4932_v59  ;;  %v758_v10 = vadd.f32 %v3927_v61, %v583_v52  ;;  %v589_v52 = vadd.f32 %v4944_v13, %v4936_v18 }
 0x127   : > { %v888_v15 = vpop.f32.mrf.mxu1  ;;  %v750_v62 = vpop.f32.mrf.mxu0 }
 0x128   : > { %v889_v58 = vadd.f32 %v888_v15, %v723_v27  ;;  %v4988_v15 = vand.u32 4294901760, %v1341_v30 }
 0x12b   : > { %v3974_v20 = vpop.f32.mrf.mxu1  ;;  %v3930_v29 = vpop.f32.mrf.mxu0 }
 0x12c   : > { %v913_v40 = vadd.f32 %v3974_v20, %v744_v8  ;;  %v751_v8 = vadd.f32 %v750_v62, %v577_v35  ;;  %v772_v61 = vadd.f32 %v3930_v29, %v595_v48  ;;  %v607_v62 = vadd.f32 %v4950_v12, %v4938_v44 }
 0x12d   : > { %v904_v46 = vpop.f32.mrf.mxu1  ;;  %v4958_v53 = vpop.f32.mrf.mxu0  ;;  %v601_v29 = vadd.f32 %v4952_v14, %v4942_v55 }
 0x12e   : > { %v905_v11 = vadd.f32 %v904_v46, %v737_v31 }
 0x131   : > { %v3977_v2 = vpop.f32.mrf.mxu1  ;;  %v4960_v60 = vpop.f32.mrf.mxu0 }
 0x133   : > { %v920_v19 = vpop.f32.mrf.mxu1  ;;  %v4964_v21 = vpop.f32.mrf.mxu0 }
 0x134   : > { %v921_v20 = vadd.f32 %v920_v19, %v751_v8  ;;  %v786_v19 = vadd.f32 %v4960_v60, %v607_v62  ;;  %v779_v45 = vadd.f32 %v4964_v21, %v601_v29 }
 0x137   : > { %v4962_v43 = vpop.f32.mrf.mxu1  ;;  %v4968_v23 = vpop.f32.mrf.mxu0 }
 0x139   : > { %v4966_v22 = vpop.f32.mrf.mxu1  ;;  %v4972_v3 = vpop.f32.mrf.mxu0 }
 0x13d   : > { %v4970_v26 = vpop.f32.mrf.mxu1 }
 0x13e   : > { %v961_v60 = vadd.f32 %v4970_v26, %v786_v19 }
 0x13f   : > { %v4974_v4 = vpop.f32.mrf.mxu1 }
 0x140   : > { %v953_v31 = vadd.f32 %v4974_v4, %v779_v45 }
 0x142   : > { %v4976_v39 = vpop.f32.mrf.mxu1 }
 0x144   : > { %v4981_v47 = vpop.f32.mrf.mxu1 }
 0x146   : > { %v4021_v28 = vpop.f32.mrf.mxu0 }
 0x147   : > { %v1102_v25 = vadd.f32 %v4021_v28, %v897_v42  ;;  %v4997_v28 = vsub.f32 %v1341_v30, %v4988_v15  ;;  %v613_v30 = vadd.f32 %v4956_v56, %v4948_v54 }
 0x148   : > { %v1095_v9 = vpop.f32.mrf.mxu0 }
 0x149   : > { %v1096_v51 = vadd.f32 %v1095_v9, %v889_v58  ;;  %v929_v58 = vadd.f32 %v3977_v2, %v758_v10  ;;  %v765_v9 = vadd.f32 %v4958_v53, %v589_v52  ;;  %v5013_v14 = vand.u32 4294901760, %v4997_v28 }
 0x14a   : > { %v4024_v16 = vpop.f32.mrf.mxu0 }
 0x14b   : > { %v1114_v38 = vadd.f32 %v4024_v16, %v913_v40  ;;  %v945_v16 = vadd.f32 %v4962_v43, %v772_v61  ;;  %v937_v12 = vadd.f32 %v4966_v22, %v765_v9  ;;  %v619_v43 = vadd.f32 %v4954_v17, %v4946_v49 }
 0x14c   : > { %v1107_v34 = vpop.f32.mrf.mxu0  ;;  %v1424_v54 = vsub.f32 %v4997_v28, %v5013_v14 }
 0x14d   : > { %v800_v49 = vadd.f32 %v4968_v23, %v619_v43 }
 0x14e   : > { %v4027_v32 = vpop.f32.mrf.mxu0  ;;  %v5038_v8 = vand.u32 4294901760, %v1424_v54 }
 0x14f   : > { %v4071_v57 = vpop.f32.mrf.mxu1  ;;  %v1126_v46 = vadd.f32 %v4027_v32, %v929_v58 }
 0x150   : > { %v1255_v50 = vadd.f32 %v4071_v57, %v1102_v25  ;;  %v1119_v1 = vpop.f32.mrf.mxu0  ;;  %v1108_v57 = vadd.f32 %v1107_v34, %v905_v11 }
 0x151   : > { %v1248_v5 = vpop.f32.mrf.mxu1  ;;  %v1120_v18 = vadd.f32 %v1119_v1, %v921_v20  ;;  %v977_v1 = vadd.f32 %v4976_v39, %v800_v49 }
 0x152   : > { %1320 = vst.msk [vmem:[#allocation2 + $0x8] sm:$0xff] %vm1318_vm1, %v1255_v50  ;;  %v1249_v63 = vadd.f32 %v1248_v5, %v1096_v51  ;;  %v4030_v37 = vpop.f32.mrf.mxu0  ;;  %v793_v50 = vadd.f32 %v4972_v3, %v613_v30 }
 0x153   : > { %v4074_v7 = vpop.f32.mrf.mxu1  ;;  %v1138_v42 = vadd.f32 %v4030_v37, %v945_v16 }
 0x154   : > { %1319 = vst.msk [vmem:[#allocation2] sm:$0xff] %vm1318_vm1, %v1249_v63  ;;  %v1267_v59 = vadd.f32 %v4074_v7, %v1114_v38  ;;  %v1131_v0 = vpop.f32.mrf.mxu0  ;;  %v969_v11 = vadd.f32 %v4981_v47, %v793_v50 }
 0x155   : > { %v1260_v33 = vpop.f32.mrf.mxu1  ;;  %v1132_v25 = vadd.f32 %v1131_v0, %v937_v12  ;;  %v5284_v12 = vld [vmem:[#allocation7_spill] sm:$0xff] }
 0x156   : > { %1322 = vst.msk [vmem:[#allocation2 + $0x18] sm:$0xff] %vm1318_vm1, %v1267_v59  ;;  %v1261_v36 = vadd.f32 %v1260_v33, %v1108_v57  ;;  %v4033_v41 = vpop.f32.mrf.mxu0 }
 0x157   : > { %v4077_v2 = vpop.f32.mrf.mxu1  ;;  %v1150_v40 = vadd.f32 %v4033_v41, %v961_v60 }
 0x158   : > { %1321 = vst.msk [vmem:[#allocation2 + $0x10] sm:$0xff] %vm1318_vm1, %v1261_v36  ;;  %v1279_v13 = vadd.f32 %v4077_v2, %v1126_v46  ;;  %v1143_v24 = vpop.f32.mrf.mxu0  ;;  %v5282_v36 = vld [vmem:[#allocation6_spill] sm:$0xff] }
 0x159   : > { %v1272_v27 = vpop.f32.mrf.mxu1  ;;  %v1334_v44 = vld [vmem:[#allocation2 + $0x8] sm:$0xff]  ;;  %v1144_v56 = vadd.f32 %v1143_v24, %v953_v31  ;;  %v5283_v24 = vld [vmem:[#allocation3_spill] sm:$0xff] }
 0x15a   : > { %1324 = vst.msk [vmem:[#allocation2 + $0x28] sm:$0xff] %vm1318_vm1, %v1279_v13  ;;  %v1273_v53 = vadd.f32 %v1272_v27, %v1120_v18  ;;  %v5007_v34 = vand.u32 4294901760, %v1334_v44  ;;  %v4036_v17 = vpop.f32.mrf.mxu0 }
 0x15b   : > { %v4080_v6 = vpop.f32.mrf.mxu1  ;;  %v1333_v55 = vld [vmem:[#allocation2] sm:$0xff]  ;;  %v1162_v3 = vadd.f32 %v4036_v17, %v977_v1 }
 0x15c   : > { %1323 = vst.msk [vmem:[#allocation2 + $0x20] sm:$0xff] %vm1318_vm1, %v1273_v53  ;;  %v1291_v22 = vadd.f32 %v4080_v6, %v1138_v42  ;;  %v5017_v32 = vand.u32 4294901760, %v1333_v55  ;;  %v1466_v26 = vsub.f32 %v1334_v44, %v5007_v34  ;;  %v1155_v38 = vpop.f32.mrf.mxu0  ;;  %v5285_v6 = vld [vmem:[#allocation8_spill] sm:$0xff] }
 0x15d   : > { %v1284_v21 = vpop.f32.mrf.mxu1  ;;  %v1156_v58 = vadd.f32 %v1155_v38, %v969_v11  ;;  %v1860_v18 = vld [vmem:[#allocation2 + $0x18] sm:$0xff] }
 0x15e   : > { %1326 = vst.msk [vmem:[#allocation2 + $0x38] sm:$0xff] %vm1318_vm1, %v1291_v22  ;;  %v1285_v51 = vadd.f32 %v1284_v21, %v1132_v25  ;;  %v1473_v10 = vsub.f32 %v1333_v55, %v5017_v32  ;;  %v1467_v48 = vand.u32 4294901760, %v1466_v26  ;;  %v5059_v19 = vand.u32 4294901760, %v1860_v18 }
 0x15f   : > { %v4083_v35 = vpop.f32.mrf.mxu1  ;;  %v1335_v5 = vld [vmem:[#allocation2 + $0x10] sm:$0xff] }
 0x160   : > { %1325 = vst.msk [vmem:[#allocation2 + $0x30] sm:$0xff] %vm1318_vm1, %v1285_v51  ;;  %v1303_v23 = vadd.f32 %v4083_v35, %v1150_v40  ;;  %v5030_v4 = vand.u32 4294901760, %v1335_v5  ;;  %v1474_v59 = vand.u32 4294901760, %v1473_v10  ;;  %v1468_v61 = vsub.f32 %v1466_v26, %v1467_v48 }
 0x161   : > { %v1296_v63 = vpop.f32.mrf.mxu1  ;;  %v1862_v62 = vld [vmem:[#allocation2 + $0x28] sm:$0xff]  ;;  %v1993_v42 = vsub.f32 %v1860_v18, %v5059_v19 }
 0x162   : > { %1328 = vst.msk [vmem:[#allocation2 + $0x48] sm:$0xff] %vm1318_vm1, %v1303_v23  ;;  %v1297_v39 = vadd.f32 %v1296_v63, %v1144_v56  ;;  %4087 = vmatprep.subr.mxu0 %v5030_v4  ;;  %v1459_v37 = vsub.f32 %v1335_v5, %v5030_v4  ;;  %v1475_v46 = vsub.f32 %v1473_v10, %v1474_v59  ;;  %v1469_v41 = vand.u32 4294901760, %v1468_v61 }
 0x163   : > { %v4086_v7 = vpop.f32.mrf.mxu1  ;;  %4088 = vmatpush3.msra.mxu0 %v5030_v4  ;;  %v5049_v9 = vand.u32 4294901760, %v1862_v62  ;;  %v1861_v16 = vld [vmem:[#allocation2 + $0x20] sm:$0xff]  ;;  %v1994_v45 = vand.u32 4294901760, %v1993_v42 }
 0x164   : > { %1327 = vst.msk [vmem:[#allocation2 + $0x40] sm:$0xff] %vm1318_vm1, %v1297_v39  ;;  %v1315_v47 = vadd.f32 %v4086_v7, %v1162_v3  ;;  %4089 = vmatprep.subr.mxu0 %v5007_v34  ;;  %v1460_v57 = vand.u32 4294901760, %v1459_v37  ;;  %v1476_v2 = vand.u32 4294901760, %v1475_v46  ;;  %v5054_v13 = vand.u32 4294901760, %v1861_v16 }
 0x165   : > { %v1308_v0 = vpop.f32.mrf.mxu1  ;;  %4090 = vmatpush3.msra.mxu0 %v5007_v34  ;;  %v1979_v29 = vsub.f32 %v1862_v62, %v5049_v9  ;;  %v1995_v25 = vsub.f32 %v1993_v42, %v1994_v45  ;;  %v2382_v49 = vld [vmem:[#allocation2 + $0x38] sm:$0xff] }
 0x166   : > { %1330 = vst.msk [vmem:[#allocation2 + $0x58] sm:$0xff] %vm1318_vm1, %v1315_v47  ;;  %v1309_v52 = vadd.f32 %v1308_v0, %v1156_v58  ;;  %4091 = vmatprep.subr.mxu0 %v5017_v32  ;;  %v1461_v33 = vsub.f32 %v1459_v37, %v1460_v57  ;;  %v1986_v27 = vsub.f32 %v1861_v16, %v5054_v13  ;;  %v5093_v21 = vand.u32 4294901760, %v2382_v49 }
 0x167   : > { %4092 = vmatpush3.msra.mxu0 %v5017_v32  ;;  %v1980_v44 = vand.u32 4294901760, %v1979_v29  ;;  %v1996_v22 = vand.u32 4294901760, %v1995_v25  ;;  %v2381_v17 = vld [vmem:[#allocation2 + $0x30] sm:$0xff] }
 0x168   : > { %1329 = vst.msk [vmem:[#allocation2 + $0x50] sm:$0xff] %vm1318_vm1, %v1309_v52  ;;  %4105 = vmatprep.subr.mxu0 %v1459_v37  ;;  %4094 = vmatmul.mubr.f32.vlgmr.msra.gmra.mxu0 %v5038_v8  ;;  %v1462_v20 = vand.u32 4294901760, %v1461_v33  ;;  %v1987_v53 = vand.u32 4294901760, %v1986_v27  ;;  %v5098_v40 = vand.u32 4294901760, %v2381_v17  ;;  %v2507_v51 = vsub.f32 %v2382_v49, %v5093_v21 }
 0x169   : > { %4106 = vmatpush3.msra.mxu0 %v1459_v37  ;;  %4111 = vmatprep.mubr.f32.mxu0 %v5282_v36  ;;  %v1981_v43 = vsub.f32 %v1979_v29, %v1980_v44  ;;  %v2902_v3 = vld [vmem:[#allocation2 + $0x48] sm:$0xff] }
 0x16a   : > { %4096 = vmatprep.subr.mxu1 %v1462_v20  ;;  %4107 = vmatprep.subr.mxu0 %v1466_v26  ;;  %v1988_v55 = vsub.f32 %v1986_v27, %v1987_v53  ;;  %v2514_v50 = vsub.f32 %v2381_v17, %v5098_v40  ;;  %v2508_v1 = vand.u32 4294901760, %v2507_v51 }
 0x16b   : > { %4097 = vmatpush3.msra.mxu1 %v1462_v20  ;;  %4108 = vmatpush3.msra.mxu0 %v1466_v26  ;;  %v1982_v60 = vand.u32 4294901760, %v1981_v43  ;;  %v2383_v30 = vld [vmem:[#allocation2 + $0x40] sm:$0xff] }
 0x16c   : > { %4098 = vmatprep.subr.mxu1 %v1469_v41  ;;  %4109 = vmatprep.subr.mxu0 %v1473_v10  ;;  %v2515_v5 = vand.u32 4294901760, %v2514_v50  ;;  %v2509_v54 = vsub.f32 %v2507_v51, %v2508_v1 }
 0x16d   : > { %4099 = vmatpush3.msra.mxu1 %v1469_v41  ;;  %4110 = vmatpush3.msra.mxu0 %v1473_v10  ;;  %v2904_v11 = vld [vmem:[#allocation2 + $0x58] sm:$0xff] }
 0x16e   : > { %4100 = vmatprep.subr.mxu1 %v1476_v2  ;;  %4123 = vmatprep.subr.mxu0 %v1460_v57  ;;  %v2516_v23 = vsub.f32 %v2514_v50, %v2515_v5  ;;  %v5126_v38 = vand.u32 4294901760, %v2904_v11 }
 0x16f   : > { %4101 = vmatpush3.msra.mxu1 %v1476_v2  ;;  %4112 = vmatmul.mubr.f32.vlgmr.msra.gmra.mxu0 %v4997_v28  ;;  %v2903_v63 = vld [vmem:[#allocation2 + $0x50] sm:$0xff] }
 0x170   : > { %4124 = vmatpush3.msra.mxu0 %v1460_v57  ;;  %4114 = vmatprep.subr.mxu1 %v5030_v4  ;;  %v2517_v10 = vand.u32 4294901760, %v2516_v23  ;;  %v5132_v39 = vand.u32 4294901760, %v2903_v63  ;;  %v3021_v37 = vsub.f32 %v2904_v11, %v5126_v38 }
 0x171   : > { %4125 = vmatprep.subr.mxu0 %v1467_v48  ;;  %4103 = vmatmul.mubr.f32.vlgmr.msra.gmra.mxu1 %v4988_v15 }
 0x172   : > { %4115 = vmatpush3.msra.mxu1 %v5030_v4  ;;  %4126 = vmatpush3.msra.mxu0 %v1467_v48  ;;  %v5137_v48 = vand.u32 4294901760, %v2902_v3  ;;  %v3028_v7 = vsub.f32 %v2903_v63, %v5132_v39  ;;  %v3022_v58 = vand.u32 4294901760, %v3021_v37 }
 0x173   : > { %4116 = vmatprep.subr.mxu1 %v5007_v34  ;;  %4127 = vmatprep.subr.mxu0 %v1474_v59 }
 0x174   : > { %4117 = vmatpush3.msra.mxu1 %v5007_v34  ;;  %4128 = vmatpush3.msra.mxu0 %v1474_v59  ;;  %v3035_v47 = vsub.f32 %v2902_v3, %v5137_v48  ;;  %v3029_v57 = vand.u32 4294901760, %v3028_v7  ;;  %v3023_v59 = vsub.f32 %v3021_v37, %v3022_v58 }
 0x175   : > { %4118 = vmatprep.subr.mxu1 %v5017_v32  ;;  %4129 = vmatprep.mubr.f32.mxu0 %v5283_v24 }
 0x176   : > { %4141 = vmatprep.subr.mxu0 %v5049_v9  ;;  %4119 = vmatpush3.msra.mxu1 %v5017_v32  ;;  %v3036_v0 = vand.u32 4294901760, %v3035_v47  ;;  %v3030_v52 = vsub.f32 %v3028_v7, %v3029_v57  ;;  %v3024_v33 = vand.u32 4294901760, %v3023_v59 }
 0x177   : > { %4130 = vmatmul.mubr.f32.vlgmr.msra.gmra.mxu0 %v4988_v15  ;;  %4120 = vmatprep.mubr.f32.mxu1 %v5284_v12 }
 0x178   : > { %4142 = vmatpush3.msra.mxu0 %v5049_v9  ;;  %4132 = vmatprep.subr.mxu1 %v5030_v4  ;;  %v3037_v61 = vsub.f32 %v3035_v47, %v3036_v0  ;;  %v3031_v20 = vand.u32 4294901760, %v3030_v52 }
 0x179   : > { %4143 = vmatprep.subr.mxu0 %v5054_v13  ;;  %4121 = vmatmul.mubr.f32.vlgmr.msra.gmra.mxu1 %v5013_v14 }
 0x17a   : > { %4133 = vmatpush3.msra.mxu1 %v5030_v4  ;;  %4144 = vmatpush3.msra.mxu0 %v5054_v13  ;;  %v2510_v4 = vand.u32 4294901760, %v2509_v54  ;;  %v3038_v46 = vand.u32 4294901760, %v3037_v61 }
 0x17b   : > { %4134 = vmatprep.subr.mxu1 %v5007_v34  ;;  %4145 = vmatprep.subr.mxu0 %v5059_v19 }
 0x17c   : > { %4135 = vmatpush3.msra.mxu1 %v5007_v34  ;;  %4146 = vmatpush3.msra.mxu0 %v5059_v19  ;;  %v1989_v34 = vand.u32 4294901760, %v1988_v55 }
 0x17d   : > { %4136 = vmatprep.subr.mxu1 %v5017_v32  ;;  %4147 = vmatprep.mubr.f32.mxu0 %v5285_v6 }
 0x17e   : > { %4159 = vmatprep.subr.mxu0 %v1979_v29  ;;  %4137 = vmatpush3.msra.mxu1 %v5017_v32  ;;  %v5087_v32 = vand.u32 4294901760, %v2383_v30 }
 0x17f   : > { %4148 = vmatmul.mubr.f32.vlgmr.msra.gmra.mxu0 %v5038_v8  ;;  %4138 = vmatprep.mubr.f32.mxu1 %v5283_v24 }
 0x180   : > { %4160 = vmatpush3.msra.mxu0 %v1979_v29  ;;  %4150 = vmatprep.subr.mxu1 %v1982_v60  ;;  %v2500_v31 = vsub.f32 %v2383_v30, %v5087_v32 }
 0x181   : > { %4161 = vmatprep.subr.mxu0 %v1986_v27  ;;  %4139 = vmatmul.mubr.f32.vlgmr.msra.gmra.mxu1 %v4988_v15 }
 0x182   : > { %4151 = vmatpush3.msra.mxu1 %v1982_v60  ;;  %4162 = vmatpush3.msra.mxu0 %v1986_v27  ;;  %v2501_v26 = vand.u32 4294901760, %v2500_v31 }
 0x183   : > { %4152 = vmatprep.subr.mxu1 %v1989_v34  ;;  %4163 = vmatprep.subr.mxu0 %v1993_v42 }
 0x184   : > { %4153 = vmatpush3.msra.mxu1 %v1989_v34  ;;  %4164 = vmatpush3.msra.mxu0 %v1993_v42  ;;  %v2502_v35 = vsub.f32 %v2500_v31, %v2501_v26 }
 0x185   : > { %4154 = vmatprep.subr.mxu1 %v1996_v22  ;;  %4165 = vmatprep.mubr.f32.mxu0 %v5282_v36 }
 0x186   : > { %4177 = vmatprep.subr.mxu0 %v1980_v44  ;;  %4155 = vmatpush3.msra.mxu1 %v1996_v22  ;;  %v2503_v56 = vand.u32 4294901760, %v2502_v35 }
 0x187   : > { %4166 = vmatmul.mubr.f32.vlgmr.msra.gmra.mxu0 %v4997_v28  ;;  %4156 = vmatprep.mubr.f32.mxu1 %v5283_v24 }
 0x188   : > { %4178 = vmatpush3.msra.mxu0 %v1980_v44  ;;  %4168 = vmatprep.subr.mxu1 %v5049_v9 }
 0x189   : > { %4179 = vmatprep.subr.mxu0 %v1987_v53  ;;  %4157 = vmatmul.mubr.f32.vlgmr.msra.gmra.mxu1 %v4988_v15 }
 0x18a   : > { %4169 = vmatpush3.msra.mxu1 %v5049_v9  ;;  %4180 = vmatpush3.msra.mxu0 %v1987_v53 }
 0x18b   : > { %4170 = vmatprep.subr.mxu1 %v5054_v13  ;;  %4181 = vmatprep.subr.mxu0 %v1994_v45 }
 0x18c   : > { %4171 = vmatpush3.msra.mxu1 %v5054_v13  ;;  %4182 = vmatpush3.msra.mxu0 %v1994_v45 }
 0x18d   : > { %4172 = vmatprep.subr.mxu1 %v5059_v19  ;;  %4183 = vmatprep.mubr.f32.mxu0 %v5283_v24 }
 0x18e   : > { %4195 = vmatprep.subr.mxu0 %v5087_v32  ;;  %4173 = vmatpush3.msra.mxu1 %v5059_v19 }
 0x18f   : > { %4184 = vmatmul.mubr.f32.vlgmr.msra.gmra.mxu0 %v4988_v15  ;;  %4174 = vmatprep.mubr.f32.mxu1 %v5284_v12 }
 0x190   : > { %4196 = vmatpush3.msra.mxu0 %v5087_v32  ;;  %4186 = vmatprep.subr.mxu1 %v5049_v9 }
 0x191   : > { %4197 = vmatprep.subr.mxu0 %v5093_v21  ;;  %4175 = vmatmul.mubr.f32.vlgmr.msra.gmra.mxu1 %v5013_v14 }
 0x192   : > { %4187 = vmatpush3.msra.mxu1 %v5049_v9  ;;  %4198 = vmatpush3.msra.mxu0 %v5093_v21 }
 0x193   : > { %4188 = vmatprep.subr.mxu1 %v5054_v13  ;;  %4199 = vmatprep.subr.mxu0 %v5098_v40 }
 0x194   : > { %4189 = vmatpush3.msra.mxu1 %v5054_v13  ;;  %4200 = vmatpush3.msra.mxu0 %v5098_v40 }
 0x195   : > { %4190 = vmatprep.subr.mxu1 %v5059_v19  ;;  %4201 = vmatprep.mubr.f32.mxu0 %v5285_v6 }
 0x196   : > { %4213 = vmatprep.subr.mxu0 %v2500_v31  ;;  %4191 = vmatpush3.msra.mxu1 %v5059_v19 }
 0x197   : > { %4202 = vmatmul.mubr.f32.vlgmr.msra.gmra.mxu0 %v5038_v8  ;;  %4192 = vmatprep.mubr.f32.mxu1 %v5283_v24 }
 0x198   : > { %4214 = vmatpush3.msra.mxu0 %v2500_v31  ;;  %4204 = vmatprep.subr.mxu1 %v2503_v56 }
 0x199   : > { %4215 = vmatprep.subr.mxu0 %v2507_v51  ;;  %4193 = vmatmul.mubr.f32.vlgmr.msra.gmra.mxu1 %v4988_v15 }
 0x19a   : > { %4205 = vmatpush3.msra.mxu1 %v2503_v56  ;;  %4216 = vmatpush3.msra.mxu0 %v2507_v51 }
 0x19b   : > { %4206 = vmatprep.subr.mxu1 %v2510_v4  ;;  %4217 = vmatprep.subr.mxu0 %v2514_v50 }
 0x19c   : > { %4207 = vmatpush3.msra.mxu1 %v2510_v4  ;;  %4218 = vmatpush3.msra.mxu0 %v2514_v50 }
 0x19d   : > { %4208 = vmatprep.subr.mxu1 %v2517_v10  ;;  %4219 = vmatprep.mubr.f32.mxu0 %v5282_v36 }
 0x19e   : > { %4231 = vmatprep.subr.mxu0 %v2501_v26  ;;  %4209 = vmatpush3.msra.mxu1 %v2517_v10 }
 0x19f   : > { %4220 = vmatmul.mubr.f32.vlgmr.msra.gmra.mxu0 %v4997_v28  ;;  %4210 = vmatprep.mubr.f32.mxu1 %v5283_v24 }
 0x1a0   : > { %4232 = vmatpush3.msra.mxu0 %v2501_v26  ;;  %4222 = vmatprep.subr.mxu1 %v5087_v32 }
 0x1a1   : > { %4233 = vmatprep.subr.mxu0 %v2508_v1  ;;  %4211 = vmatmul.mubr.f32.vlgmr.msra.gmra.mxu1 %v4988_v15 }
 0x1a2   : > { %4223 = vmatpush3.msra.mxu1 %v5087_v32  ;;  %4234 = vmatpush3.msra.mxu0 %v2508_v1 }
 0x1a3   : > { %4224 = vmatprep.subr.mxu1 %v5093_v21  ;;  %4235 = vmatprep.subr.mxu0 %v2515_v5 }
 0x1a4   : > { %4225 = vmatpush3.msra.mxu1 %v5093_v21  ;;  %4236 = vmatpush3.msra.mxu0 %v2515_v5 }
 0x1a5   : > { %4226 = vmatprep.subr.mxu1 %v5098_v40  ;;  %4237 = vmatprep.mubr.f32.mxu0 %v5283_v24 }
 0x1a6   : > { %4249 = vmatprep.subr.mxu0 %v5126_v38  ;;  %4227 = vmatpush3.msra.mxu1 %v5098_v40 }
 0x1a7   : > { %4238 = vmatmul.mubr.f32.vlgmr.msra.gmra.mxu0 %v4988_v15  ;;  %4228 = vmatprep.mubr.f32.mxu1 %v5284_v12 }
 0x1a8   : > { %4250 = vmatpush3.msra.mxu0 %v5126_v38  ;;  %4240 = vmatprep.subr.mxu1 %v5087_v32 }
 0x1a9   : > { %4251 = vmatprep.subr.mxu0 %v5132_v39  ;;  %4229 = vmatmul.mubr.f32.vlgmr.msra.gmra.mxu1 %v5013_v14 }
 0x1aa   : > { %4241 = vmatpush3.msra.mxu1 %v5087_v32  ;;  %4252 = vmatpush3.msra.mxu0 %v5132_v39 }
 0x1ab   : > { %4242 = vmatprep.subr.mxu1 %v5093_v21  ;;  %4253 = vmatprep.subr.mxu0 %v5137_v48 }
 0x1ac   : > { %4243 = vmatpush3.msra.mxu1 %v5093_v21  ;;  %4254 = vmatpush3.msra.mxu0 %v5137_v48 }
 0x1ad   : > { %4244 = vmatprep.subr.mxu1 %v5098_v40  ;;  %4255 = vmatprep.mubr.f32.mxu0 %v5285_v6 }
 0x1ae   : > { %4267 = vmatprep.subr.mxu0 %v3021_v37  ;;  %4245 = vmatpush3.msra.mxu1 %v5098_v40 }
 0x1af   : > { %4256 = vmatmul.mubr.f32.vlgmr.msra.gmra.mxu0 %v5038_v8  ;;  %4246 = vmatprep.mubr.f32.mxu1 %v5283_v24 }
 0x1b0   : > { %4268 = vmatpush3.msra.mxu0 %v3021_v37  ;;  %4258 = vmatprep.subr.mxu1 %v3024_v33 }
 0x1b1   : > { %4269 = vmatprep.subr.mxu0 %v3028_v7  ;;  %4247 = vmatmul.mubr.f32.vlgmr.msra.gmra.mxu1 %v4988_v15 }
 0x1b2   : > { %4259 = vmatpush3.msra.mxu1 %v3024_v33  ;;  %4270 = vmatpush3.msra.mxu0 %v3028_v7 }
 0x1b3   : > { %4260 = vmatprep.subr.mxu1 %v3031_v20  ;;  %4271 = vmatprep.subr.mxu0 %v3035_v47 }
 0x1b4   : > { %4261 = vmatpush3.msra.mxu1 %v3031_v20  ;;  %4272 = vmatpush3.msra.mxu0 %v3035_v47 }
 0x1b5   : > { %4262 = vmatprep.subr.mxu1 %v3038_v46  ;;  %4273 = vmatprep.mubr.f32.mxu0 %v5282_v36 }
 0x1b6   : > { %4285 = vmatprep.subr.mxu0 %v3022_v58  ;;  %4263 = vmatpush3.msra.mxu1 %v3038_v46 }
 0x1b7   : > { %4274 = vmatmul.mubr.f32.vlgmr.msra.gmra.mxu0 %v4997_v28  ;;  %4264 = vmatprep.mubr.f32.mxu1 %v5283_v24 }
 0x1b8   : > { %4286 = vmatpush3.msra.mxu0 %v3022_v58  ;;  %4276 = vmatprep.subr.mxu1 %v5126_v38 }
 0x1b9   : > { %4287 = vmatprep.subr.mxu0 %v3029_v57  ;;  %4265 = vmatmul.mubr.f32.vlgmr.msra.gmra.mxu1 %v4988_v15 }
 0x1ba   : > { %4277 = vmatpush3.msra.mxu1 %v5126_v38  ;;  %4288 = vmatpush3.msra.mxu0 %v3029_v57 }
 0x1bb   : > { %4278 = vmatprep.subr.mxu1 %v5132_v39  ;;  %4289 = vmatprep.subr.mxu0 %v3036_v0 }
 0x1bc   : > { %4279 = vmatpush3.msra.mxu1 %v5132_v39  ;;  %4290 = vmatpush3.msra.mxu0 %v3036_v0 }
 0x1bd   : > { %4280 = vmatprep.subr.mxu1 %v5137_v48  ;;  %4282 = vmatprep.mubr.f32.mxu1 %v5284_v12 }
 0x1be   : > { %4281 = vmatpush3.msra.mxu1 %v5137_v48  ;;  %4291 = vmatprep.mubr.f32.mxu0 %v5283_v24 }
 0x1bf   : > { %4294 = vmatprep.subr.mxu1 %v5126_v38  ;;  %4283 = vmatmul.mubr.f32.vlgmr.msra.gmra.mxu1 %v5013_v14 }
 0x1c0   : > { %4295 = vmatpush3.msra.mxu1 %v5126_v38  ;;  %4292 = vmatmul.mubr.f32.vlgmr.msra.gmra.mxu0 %v4988_v15 }
 0x1c1   : > { %4296 = vmatprep.subr.mxu1 %v5132_v39  ;;  %4300 = vmatprep.mubr.f32.mxu1 %v5283_v24 }
 0x1c2   : > { %4297 = vmatpush3.msra.mxu1 %v5132_v39 }
 0x1c3   : > { %4298 = vmatprep.subr.mxu1 %v5137_v48 }
 0x1c4   : > { %4299 = vmatpush3.msra.mxu1 %v5137_v48 }
 0x1c5   : > { %4301 = vmatmul.mubr.f32.vlgmr.msra.gmra.mxu1 %v4988_v15 }
 0x228   : > { %v4095_v28 = vpop.f32.mrf.mxu0 }
 0x22a   : > { %v1417_v8 = vpop.f32.mrf.mxu0 }
 0x22f   : > { %v4113_v41 = vpop.f32.mrf.mxu0 }
 0x231   : > { %v4104_v36 = vpop.f32.mrf.mxu1  ;;  %v1597_v9 = vpop.f32.mrf.mxu0 }
 0x232   : > { %v1520_v62 = vadd.f32 %v4104_v36, %v4095_v28 }
 0x233   : > { %v1513_v14 = vpop.f32.mrf.mxu1 }
 0x234   : > { %v1514_v2 = vadd.f32 %v1513_v14, %v1417_v8  ;;  %v1605_v18 = vadd.f32 %v4113_v41, %v1520_v62 }
 0x236   : > { %v1598_v19 = vadd.f32 %v1597_v9, %v1514_v2 }
 0x237   : > { %v4131_v29 = vpop.f32.mrf.mxu0 }
 0x239   : > { %v4122_v16 = vpop.f32.mrf.mxu1  ;;  %v1768_v15 = vpop.f32.mrf.mxu0 }
 0x23a   : > { %v1689_v24 = vadd.f32 %v4122_v16, %v1605_v18 }
 0x23b   : > { %v1680_v13 = vpop.f32.mrf.mxu1 }
 0x23c   : > { %v1681_v27 = vadd.f32 %v1680_v13, %v1598_v19  ;;  %v1775_v44 = vadd.f32 %v4131_v29, %v1689_v24 }
 0x23e   : > { %v1769_v42 = vadd.f32 %v1768_v15, %v1681_v27 }
 0x23f   : > { %v4149_v6 = vpop.f32.mrf.mxu0 }
 0x241   : > { %v4140_v12 = vpop.f32.mrf.mxu1  ;;  %v1937_v55 = vpop.f32.mrf.mxu0 }
 0x242   : > { %v1855_v53 = vadd.f32 %v4140_v12, %v1775_v44 }
 0x243   : > { %v1848_v43 = vpop.f32.mrf.mxu1 }
 0x244   : > { %1859 = vst.msk [vmem:[%s5191_s13 + $0x8] sm:$0xff] %vm1318_vm1, %v1855_v53  ;;  %v1849_v45 = vadd.f32 %v1848_v43, %v1769_v42 }
 0x246   : > { %1858 = vst.msk [vmem:[%s5191_s13] sm:$0xff] %vm1318_vm1, %v1849_v45 }
 0x247   : > { %v4167_v34 = vpop.f32.mrf.mxu0 }
 0x249   : > { %v4158_v60 = vpop.f32.mrf.mxu1  ;;  %v2117_v32 = vpop.f32.mrf.mxu0 }
 0x24a   : > { %v2040_v22 = vadd.f32 %v4158_v60, %v4149_v6 }
 0x24b   : > { %v2033_v25 = vpop.f32.mrf.mxu1 }
 0x24c   : > { %v2034_v30 = vadd.f32 %v2033_v25, %v1937_v55  ;;  %v2125_v17 = vadd.f32 %v4167_v34, %v2040_v22 }
 0x24e   : > { %v2118_v40 = vadd.f32 %v2117_v32, %v2034_v30 }
 0x24f   : > { %v4185_v31 = vpop.f32.mrf.mxu0 }
 0x251   : > { %v4176_v49 = vpop.f32.mrf.mxu1  ;;  %v2288_v50 = vpop.f32.mrf.mxu0 }
 0x252   : > { %v2209_v51 = vadd.f32 %v4176_v49, %v2125_v17 }
 0x253   : > { %v2200_v21 = vpop.f32.mrf.mxu1 }
 0x254   : > { %v2201_v26 = vadd.f32 %v2200_v21, %v2118_v40  ;;  %v2295_v1 = vadd.f32 %v4185_v31, %v2209_v51 }
 0x256   : > { %v2289_v5 = vadd.f32 %v2288_v50, %v2201_v26 }
 0x257   : > { %v4203_v4 = vpop.f32.mrf.mxu0 }
 0x259   : > { %v4194_v35 = vpop.f32.mrf.mxu1  ;;  %v2458_v10 = vpop.f32.mrf.mxu0 }
 0x25a   : > { %v2375_v54 = vadd.f32 %v4194_v35, %v2295_v1 }
 0x25b   : > { %v2368_v56 = vpop.f32.mrf.mxu1 }
 0x25c   : > { %3491 = vst.msk [vmem:[%s5191_s13 + $0x18] sm:$0xff] %vm1318_vm1, %v2375_v54  ;;  %v2369_v23 = vadd.f32 %v2368_v56, %v2289_v5 }
 0x25e   : > { %3490 = vst.msk [vmem:[%s5191_s13 + $0x10] sm:$0xff] %vm1318_vm1, %v2369_v23 }
 0x25f   : > { %v4221_v63 = vpop.f32.mrf.mxu0 }
 0x261   : > { %v4212_v11 = vpop.f32.mrf.mxu1  ;;  %v2638_v37 = vpop.f32.mrf.mxu0 }
 0x262   : > { %v2561_v3 = vadd.f32 %v4212_v11, %v4203_v4 }
 0x263   : > { %v2554_v38 = vpop.f32.mrf.mxu1 }
 0x264   : > { %v2555_v39 = vadd.f32 %v2554_v38, %v2458_v10  ;;  %v2646_v7 = vadd.f32 %v4221_v63, %v2561_v3 }
 0x266   : > { %v2639_v57 = vadd.f32 %v2638_v37, %v2555_v39 }
 0x267   : > { %v4239_v47 = vpop.f32.mrf.mxu0 }
 0x269   : > { %v4230_v48 = vpop.f32.mrf.mxu1  ;;  %v2809_v52 = vpop.f32.mrf.mxu0 }
 0x26a   : > { %v2730_v59 = vadd.f32 %v4230_v48, %v2646_v7 }
 0x26b   : > { %v2721_v58 = vpop.f32.mrf.mxu1 }
 0x26c   : > { %v2722_v0 = vadd.f32 %v2721_v58, %v2639_v57  ;;  %v2816_v33 = vadd.f32 %v4239_v47, %v2730_v59 }
 0x26e   : > { %v2810_v46 = vadd.f32 %v2809_v52, %v2722_v0 }
 0x26f   : > { %v4257_v20 = vpop.f32.mrf.mxu0 }
 0x271   : > { %v4248_v61 = vpop.f32.mrf.mxu1  ;;  %v2979_v14 = vpop.f32.mrf.mxu0 }
 0x272   : > { %v2896_v28 = vadd.f32 %v4248_v61, %v2816_v33 }
 0x273   : > { %v2889_v8 = vpop.f32.mrf.mxu1 }
 0x274   : > { %3493 = vst.msk [vmem:[%s5191_s13 + $0x28] sm:$0xff] %vm1318_vm1, %v2896_v28  ;;  %v2890_v36 = vadd.f32 %v2889_v8, %v2810_v46 }
 0x276   : > { %3492 = vst.msk [vmem:[%s5191_s13 + $0x20] sm:$0xff] %vm1318_vm1, %v2890_v36 }
 0x277   : > { %v4275_v62 = vpop.f32.mrf.mxu0 }
 0x279   : > { %v4266_v41 = vpop.f32.mrf.mxu1  ;;  %v3159_v18 = vpop.f32.mrf.mxu0 }
 0x27a   : > { %v3082_v2 = vadd.f32 %v4266_v41, %v4257_v20 }
 0x27b   : > { %v3075_v9 = vpop.f32.mrf.mxu1 }
 0x27c   : > { %v3076_v16 = vadd.f32 %v3075_v9, %v2979_v14  ;;  %v3167_v13 = vadd.f32 %v4275_v62, %v3082_v2 }
 0x27e   : > { %v3160_v19 = vadd.f32 %v3159_v18, %v3076_v16 }
 0x27f   : > { %v4284_v29 = vpop.f32.mrf.mxu1 }
 0x280   : > { %v3251_v24 = vadd.f32 %v4284_v29, %v3167_v13  ;;  %v4293_v27 = vpop.f32.mrf.mxu0 }
 0x281   : > { %v3242_v15 = vpop.f32.mrf.mxu1 }
 0x282   : > { %v3243_v44 = vadd.f32 %v3242_v15, %v3160_v19  ;;  %v3330_v12 = vpop.f32.mrf.mxu0  ;;  %v3337_v42 = vadd.f32 %v4293_v27, %v3251_v24 }
 0x284   : > { %v3331_v43 = vadd.f32 %v3330_v12, %v3243_v44 }
 0x285   : > { %v4302_v53 = vpop.f32.mrf.mxu1 }
 0x286   : > { %v3417_v45 = vadd.f32 %v4302_v53, %v3337_v42 }
 0x287   : > { %v3410_v6 = vpop.f32.mrf.mxu1 }
 0x288   : > { %3495 = vst.msk [vmem:[%s5191_s13 + $0x38] sm:$0xff] %vm1318_vm1, %v3417_v45  ;;  %v3411_v55 = vadd.f32 %v3410_v6, %v3331_v43 }
 0x28a   : > { %3494 = vst.msk [vmem:[%s5191_s13 + $0x30] sm:$0xff] %vm1318_vm1, %v3411_v55 }
 0x28b PF: > { %s13_s12 = sadd.s32 1, %s4317_s12  }
 0x28c   : > { %p10_p5 = scmp.ge.s32.totalorder %s13_s12, 4  }
 0x28e   :  { %12 = sbr.rel (!%p10_p5) target bundleno = 1 (0x1), region = 65 }

</bundles_post_ra>
